<compile_context>
chip_gen: v6e
topology: v6e:2x2x1
jax: 0.10.0
libtpu: 0.0.40
codegen_flags: <defaults>
</compile_context>

<pallas_src>
import functools
import math

import jax
import jax.numpy as jnp
from jax.experimental import pallas as pl
from jax.experimental.pallas import tpu as pltpu


def _round_up(x, m):
    return (x + m - 1) // m * m


# ---------------------------------------------------------------------------
# Fused kernel: all layers, whole batch, head LayerNorm epilogue
# ---------------------------------------------------------------------------

def fused_transformer_kernel(x0_ref, wqkv_ref, wmisc_ref, w2_ref, vec_ref,
                             out_ref, xs_ref,
                             *, batch, seq_len, n_embed, head_size, matmul_dtype):
    layer = pl.program_id(0)
    n_layers = pl.num_programs(0)
    bs, ep = xs_ref.shape
    hp = w2_ref.shape[1]

    # Load the activation into the resident VMEM scratch once.
    @pl.when(layer == 0)
    def _():
        xs_ref[...] = x0_ref[...].astype(jnp.float32)

    # Lane mask: LayerNorm statistics only over the real E lanes (pad lanes are 0).
    lane = jax.lax.broadcasted_iota(jnp.int32, (1, ep), 1)
    lane_mask = (lane < n_embed).astype(jnp.float32)
    inv_e = 1.0 / float(n_embed)

    def layer_norm(v, w, b, eps=1e-5):
        mean = jnp.sum(v, axis=-1, keepdims=True) * inv_e          # pad lanes == 0
        centered = (v - mean) * lane_mask
        var = jnp.sum(centered * centered, axis=-1, keepdims=True) * inv_e
        return centered * jax.lax.rsqrt(var + eps) * w + b

    def mm(a, w):
        # bf16 operands (weights already bf16), f32 accumulate on the MXU.
        return jnp.dot(a.astype(matmul_dtype), w.astype(matmul_dtype),
                       preferred_element_type=jnp.float32)

    x = xs_ref[...]                                   # (BS, Ep) f32, VMEM-resident

    vec = vec_ref[0]                                  # (16, P) packed vectors (f32)
    ln1w, ln1b = vec[0:1, :ep], vec[1:2, :ep]
    b_q, b_k, b_v = vec[2:3, :ep], vec[3:4, :ep], vec[4:5, :ep]
    b_o = vec[5:6, :ep]
    ln2w, ln2b = vec[6:7, :ep], vec[7:8, :ep]
    b1 = vec[8:9, :hp]
    b2 = vec[9:10, :ep]

    wqkv = wqkv_ref[0]                                # (Ep, 3*Ep) bf16
    wmisc = wmisc_ref[0]                              # (Ep, Ep+Hp) bf16
    w_o = wmisc[:, :ep]
    w1 = wmisc[:, ep:]
    w2 = w2_ref[0]                                    # (Hp, Ep) bf16

    # --- pre-norm + single-head attention (num_heads = 1 -> head_size = E) ---
    xn = layer_norm(x, ln1w, ln1b)
    qkv = mm(xn, wqkv)                                # one wide MXU matmul
    q = qkv[:, :ep] + b_q                             # 128-aligned lane slices: free
    k = qkv[:, ep:2 * ep] + b_k
    v = qkv[:, 2 * ep:] + b_v

    # scores = Q K^T / sqrt(head_size); block-diagonal mask keeps attention per-batch
    scores = jax.lax.dot_general(
        q.astype(matmul_dtype), k.astype(matmul_dtype),
        (((1,), (1,)), ((), ())), preferred_element_type=jnp.float32)
    scores = scores * (1.0 / math.sqrt(float(head_size)))

    if batch > 1:
        # same-batch(i, j)  <=>  for every boundary b*S, rows i and j lie on the
        # same side (avoids vector integer division; B-1 compares on the VPU).
        row_ids = jax.lax.broadcasted_iota(jnp.int32, (bs, bs), 0)
        col_ids = jax.lax.broadcasted_iota(jnp.int32, (bs, bs), 1)
        same = None
        for b in range(1, batch):
            t = b * seq_len
            cond = (row_ids >= t) == (col_ids >= t)
            same = cond if same is None else jnp.logical_and(same, cond)
        scores = jnp.where(same, scores, jnp.float32(-1e9))

    scores = scores - jnp.max(scores, axis=-1, keepdims=True)
    e = jnp.exp(scores)
    attn_w = e * pl.reciprocal(jnp.sum(e, axis=-1, keepdims=True), approx=True)
    attended = mm(attn_w, v)
    attn_out = mm(attended, w_o) + b_o

    h = x + attn_out                                  # residual

    # --- pre-norm + MLP: Linear -> GELU(exact erf) -> Linear ---
    hn = layer_norm(h, ln2w, ln2b)
    m = mm(hn, w1) + b1
    m = 0.5 * m * (1.0 + jax.lax.erf(m * (1.0 / math.sqrt(2.0))))
    m = mm(m, w2) + b2

    x_new = h + m                                     # residual
    xs_ref[...] = x_new

    # Epilogue: mlp_head = LayerNorm on the CLS rows (row b*S for each batch b),
    # gathered with a single sublane-strided read from the resident scratch.
    @pl.when(layer == n_layers - 1)
    def _():
        cls_rows = xs_ref[pl.ds(0, batch, stride=seq_len), :]     # (B, Ep)
        head_w = vec[10:11, :ep]
        head_b = vec[11:12, :ep]
        out_ref[...] = layer_norm(cls_rows, head_w, head_b).astype(out_ref.dtype)


# ---------------------------------------------------------------------------
# Wrapper
# ---------------------------------------------------------------------------

def transformer_forward(tokens, params, packed, *, matmul_dtype=jnp.bfloat16):
    # --- glue (plain JAX): embedding gather, CLS concat, positional embedding ---
    emb = params["embedding"][tokens]                           # (B, T, E)
    B, T, E = emb.shape
    S = T + 1
    cls = jnp.broadcast_to(params["cls_token"], (B, 1, E))
    x = jnp.concatenate([cls, emb], axis=1) + params["pos_embedding"][:, :S]
    # dropout = identity (inference)

    L, Ep, _ = packed["wqkv"].shape
    Hp = packed["w2"].shape[1]
    P = packed["vec"].shape[-1]
    BS = B * S

    x2 = jnp.pad(x.reshape(BS, E).astype(jnp.float32), ((0, 0), (0, Ep - E)))

    kernel = functools.partial(
        fused_transformer_kernel,
        batch=B, seq_len=S, n_embed=E, head_size=E,          # num_heads = 1
        matmul_dtype=matmul_dtype)

    out = pl.pallas_call(
        kernel,
        out_shape=jax.ShapeDtypeStruct((B, Ep), jnp.float32),
        grid=(L,),
        in_specs=[
            pl.BlockSpec((BS, Ep), lambda l: (0, 0)),              # activation (once)
            pl.BlockSpec((1, Ep, 3 * Ep), lambda l: (l, 0, 0)),    # Wq|Wk|Wv (bf16)
            pl.BlockSpec((1, Ep, Ep + Hp), lambda l: (l, 0, 0)),   # Wo|W1   (bf16)
            pl.BlockSpec((1, Hp, Ep), lambda l: (l, 0, 0)),        # W2      (bf16)
            pl.BlockSpec((1, 16, P), lambda l: (l, 0, 0)),         # packed vectors
        ],
        out_specs=pl.BlockSpec((B, Ep), lambda l: (0, 0)),
        scratch_shapes=[pltpu.VMEM((BS, Ep), jnp.float32)],        # resident activation
        compiler_params=pltpu.CompilerParams(
            dimension_semantics=("arbitrary",),
            vmem_limit_bytes=32 * 1024 * 1024),
    )(x2, packed["wqkv"], packed["wmisc"], packed["w2"], packed["vec"])

    return out[:, :E]


# ---------------------------------------------------------------------------
# Parameter construction + packing (pad to lane-dense 128-wide layouts, bf16 weights)
# ---------------------------------------------------------------------------

def make_params(key, vocab, embed_dim, hidden_dim, num_layers, max_seq_len):
    keys = iter(jax.random.split(key, 64))

    def lin(kin, kout):
        w = 0.02 * jax.random.normal(next(keys), (kin, kout), jnp.float32)
        b = 0.02 * jax.random.normal(next(keys), (kout,), jnp.float32)
        return w, b

    layers = []
    for _ in range(num_layers):
        wq, bq = lin(embed_dim, embed_dim)
        wk, bk = lin(embed_dim, embed_dim)
        wv, bv = lin(embed_dim, embed_dim)
        wo, bo = lin(embed_dim, embed_dim)
        w1, b1 = lin(embed_dim, hidden_dim)
        w2, b2 = lin(hidden_dim, embed_dim)
        layers.append(dict(
            ln1_w=jnp.ones((embed_dim,), jnp.float32),
            ln1_b=jnp.zeros((embed_dim,), jnp.float32),
            wq=wq, bq=bq, wk=wk, bk=bk, wv=wv, bv=bv, wo=wo, bo=bo,
            ln2_w=jnp.ones((embed_dim,), jnp.float32),
            ln2_b=jnp.zeros((embed_dim,), jnp.float32),
            w1=w1, b1=b1, w2=w2, b2=b2,
        ))

    return dict(
        embedding=jax.random.normal(next(keys), (vocab, embed_dim), jnp.float32),
        cls_token=jax.random.normal(next(keys), (1, 1, embed_dim), jnp.float32),
        pos_embedding=jax.random.normal(next(keys), (1, max_seq_len, embed_dim),
                                        jnp.float32),
        layers=layers,
        head_w=jnp.ones((embed_dim,), jnp.float32),   # nn.LayerNorm default init
        head_b=jnp.zeros((embed_dim,), jnp.float32),
    )


def pack_params(params, ep, hp):
    pmax = max(ep, hp)

    def padv(v, n):
        v = jnp.asarray(v, jnp.float32).reshape(-1)
        return jnp.pad(v, (0, n - v.shape[0]))

    def padm(w, r, c):
        w = jnp.asarray(w, jnp.float32)
        return jnp.pad(w, ((0, r - w.shape[0]), (0, c - w.shape[1])))

    num_layers = len(params["layers"])
    wqkv, wmisc, w2s, vecs = [], [], [], []
    for li, lp in enumerate(params["layers"]):
        wqkv.append(jnp.concatenate(
            [padm(lp["wq"], ep, ep), padm(lp["wk"], ep, ep),
             padm(lp["wv"], ep, ep)], axis=1))                       # (Ep, 3Ep)
        wmisc.append(jnp.concatenate(
            [padm(lp["wo"], ep, ep), padm(lp["w1"], ep, hp)], axis=1))  # (Ep, Ep+Hp)
        w2s.append(padm(lp["w2"], hp, ep))                           # (Hp, Ep)

        rows = [padv(lp["ln1_w"], pmax), padv(lp["ln1_b"], pmax),
                padv(lp["bq"], pmax), padv(lp["bk"], pmax), padv(lp["bv"], pmax),
                padv(lp["bo"], pmax),
                padv(lp["ln2_w"], pmax), padv(lp["ln2_b"], pmax),
                padv(lp["b1"], pmax), padv(lp["b2"], pmax)]
        if li == num_layers - 1:      # head LayerNorm folded into the last layer's block
            rows += [padv(params["head_w"], pmax), padv(params["head_b"], pmax)]
        else:
            rows += [jnp.zeros((pmax,), jnp.float32)] * 2
        rows += [jnp.zeros((pmax,), jnp.float32)] * (16 - len(rows))
        vecs.append(jnp.stack(rows))

    return dict(
        wqkv=jnp.stack(wqkv).astype(jnp.bfloat16),    # bf16 weight storage in HBM
        wmisc=jnp.stack(wmisc).astype(jnp.bfloat16),
        w2=jnp.stack(w2s).astype(jnp.bfloat16),
        vec=jnp.stack(vecs),                          # LN params / biases stay f32
    )


# ---------------------------------------------------------------------------

if __name__ == "__main__":
    VOCAB = 1000
    EMBED_DIM = 32
    HIDDEN_DIM = 32
    NUM_LAYERS = 2
    MAX_SEQ = 1 + 256          # module's fixed sequence_length (pos_embedding size)
    B, T = 2, 8                # small test shapes

    key = jax.random.PRNGKey(0)
    pkey, tkey = jax.random.split(key)
    params = make_params(pkey, VOCAB, EMBED_DIM, HIDDEN_DIM, NUM_LAYERS, MAX_SEQ)

    Ep = _round_up(EMBED_DIM, 128)
    Hp = _round_up(HIDDEN_DIM, 128)
    packed = pack_params(params, Ep, Hp)

    tokens = jax.random.randint(tkey, (B, T), 0, VOCAB, dtype=jnp.int32)

    out = transformer_forward(tokens, params, packed)
    out = jax.block_until_ready(out)
    assert out.shape == (B, EMBED_DIM), out.shape
    assert bool(jnp.all(jnp.isfinite(out)))
    print("KERNEL_OK")
</pallas_src>

<mosaic_0001>
module attributes {stable_mosaic.version = 11 : i64} {
  func.func @fused_transformer_kernel(%arg0: i32, %arg1: memref<18x128xf32, #tpu.memory_space<vmem>>, %arg2: memref<1x128x384xbf16, #tpu.memory_space<vmem>>, %arg3: memref<1x128x256xbf16, #tpu.memory_space<vmem>>, %arg4: memref<1x128x128xbf16, #tpu.memory_space<vmem>>, %arg5: memref<1x16x128xf32, #tpu.memory_space<vmem>>, %arg6: memref<2x128xf32, #tpu.memory_space<vmem>>, %arg7: memref<18x128xf32, #tpu.memory_space<vmem>>) attributes {dimension_semantics = [#tpu.dimension_semantics<arbitrary>], iteration_bounds = array<i64: 2>, scalar_prefetch = 0 : i64, scratch_operands = 1 : i64, tpu.core_type = #tpu.core_type<tc>, window_params = [{pipeline_mode = #tpu.pipeline_mode<synchronous>, transform_indices = @transform_0, window_bounds = array<i64: 18, 128>}, {transform_indices = @transform_1, window_bounds = array<i64: 1, 128, 384>}, {transform_indices = @transform_2, window_bounds = array<i64: 1, 128, 256>}, {transform_indices = @transform_3, window_bounds = array<i64: 1, 128, 128>}, {transform_indices = @transform_4, window_bounds = array<i64: 1, 16, 128>}, {pipeline_mode = #tpu.pipeline_mode<synchronous>, transform_indices = @transform_5, window_bounds = array<i64: 2, 128>}]} {
    %c0_i32 = arith.constant 0 : i32
    %0 = arith.cmpi eq, %arg0, %c0_i32 : i32
    %1 = arith.extui %0 : i1 to i32
    %c0_i32_0 = arith.constant 0 : i32
    %2 = arith.cmpi ne, %1, %c0_i32_0 : i32
    scf.if %2 {
      %c0_41 = arith.constant 0 : index
      %c0_42 = arith.constant 0 : index
      %138 = vector.load %arg1[%c0_41, %c0_42] : memref<18x128xf32, #tpu.memory_space<vmem>>, vector<18x128xf32>
      %c0_43 = arith.constant 0 : index
      %c0_44 = arith.constant 0 : index
      %139 = vector.load %arg7[%c0_43, %c0_44] : memref<18x128xf32, #tpu.memory_space<vmem>>, vector<18x128xf32>
      tpu.vector_store %arg7[%c0_43, %c0_44], %138 {strides = array<i32>} : memref<18x128xf32, #tpu.memory_space<vmem>>, vector<18x128xf32>,
    } else {
    }
    %3 = tpu.iota {dimensions = array<i32: 1>} : vector<1x128xi32>
    %c32_i32 = arith.constant 32 : i32
    %4 = vector.broadcast %c32_i32 : i32 to vector<1x128xi32>
    %5 = arith.cmpi slt, %3, %4 : vector<1x128xi32>
    %6 = arith.extui %5 : vector<1x128xi1> to vector<1x128xi32>
    %7 = arith.sitofp %6 : vector<1x128xi32> to vector<1x128xf32>
    %c0 = arith.constant 0 : index
    %c0_1 = arith.constant 0 : index
    %8 = vector.load %arg7[%c0, %c0_1] : memref<18x128xf32, #tpu.memory_space<vmem>>, vector<18x128xf32>
    %c0_2 = arith.constant 0 : index
    %c0_3 = arith.constant 0 : index
    %c0_4 = arith.constant 0 : index
    %9 = vector.load %arg5[%c0_2, %c0_3, %c0_4] : memref<1x16x128xf32, #tpu.memory_space<vmem>>, vector<1x16x128xf32>
    %10 = vector.shape_cast %9 : vector<1x16x128xf32> to vector<16x128xf32>
    %11 = vector.extract_strided_slice %10 {offsets = [0, 0], sizes = [1, 128], strides = [1, 1]} : vector<16x128xf32> to vector<1x128xf32>
    %12 = vector.extract_strided_slice %10 {offsets = [1, 0], sizes = [1, 128], strides = [1, 1]} : vector<16x128xf32> to vector<1x128xf32>
    %13 = vector.extract_strided_slice %10 {offsets = [2, 0], sizes = [1, 128], strides = [1, 1]} : vector<16x128xf32> to vector<1x128xf32>
    %14 = vector.extract_strided_slice %10 {offsets = [3, 0], sizes = [1, 128], strides = [1, 1]} : vector<16x128xf32> to vector<1x128xf32>
    %15 = vector.extract_strided_slice %10 {offsets = [4, 0], sizes = [1, 128], strides = [1, 1]} : vector<16x128xf32> to vector<1x128xf32>
    %16 = vector.extract_strided_slice %10 {offsets = [5, 0], sizes = [1, 128], strides = [1, 1]} : vector<16x128xf32> to vector<1x128xf32>
    %17 = vector.extract_strided_slice %10 {offsets = [6, 0], sizes = [1, 128], strides = [1, 1]} : vector<16x128xf32> to vector<1x128xf32>
    %18 = vector.extract_strided_slice %10 {offsets = [7, 0], sizes = [1, 128], strides = [1, 1]} : vector<16x128xf32> to vector<1x128xf32>
    %19 = vector.extract_strided_slice %10 {offsets = [8, 0], sizes = [1, 128], strides = [1, 1]} : vector<16x128xf32> to vector<1x128xf32>
    %20 = vector.extract_strided_slice %10 {offsets = [9, 0], sizes = [1, 128], strides = [1, 1]} : vector<16x128xf32> to vector<1x128xf32>
    %c0_5 = arith.constant 0 : index
    %c0_6 = arith.constant 0 : index
    %c0_7 = arith.constant 0 : index
    %21 = vector.load %arg2[%c0_5, %c0_6, %c0_7] : memref<1x128x384xbf16, #tpu.memory_space<vmem>>, vector<1x128x384xbf16>
    %22 = vector.shape_cast %21 : vector<1x128x384xbf16> to vector<128x384xbf16>
    %c0_8 = arith.constant 0 : index
    %c0_9 = arith.constant 0 : index
    %c0_10 = arith.constant 0 : index
    %23 = vector.load %arg3[%c0_8, %c0_9, %c0_10] : memref<1x128x256xbf16, #tpu.memory_space<vmem>>, vector<1x128x256xbf16>
    %24 = vector.shape_cast %23 : vector<1x128x256xbf16> to vector<128x256xbf16>
    %25 = vector.extract_strided_slice %24 {offsets = [0, 0], sizes = [128, 128], strides = [1, 1]} : vector<128x256xbf16> to vector<128x128xbf16>
    %26 = vector.extract_strided_slice %24 {offsets = [0, 128], sizes = [128, 128], strides = [1, 1]} : vector<128x256xbf16> to vector<128x128xbf16>
    %c0_11 = arith.constant 0 : index
    %c0_12 = arith.constant 0 : index
    %c0_13 = arith.constant 0 : index
    %27 = vector.load %arg4[%c0_11, %c0_12, %c0_13] : memref<1x128x128xbf16, #tpu.memory_space<vmem>>, vector<1x128x128xbf16>
    %28 = vector.shape_cast %27 : vector<1x128x128xbf16> to vector<128x128xbf16>
    %cst = arith.constant dense<0.000000e+00> : vector<18xf32>
    %29 = vector.multi_reduction <add>, %8, %cst [1] : vector<18x128xf32> to vector<18xf32>
    %30 = vector.shape_cast %29 : vector<18xf32> to vector<18x1xf32>
    %cst_14 = arith.constant 3.125000e-02 : f32
    %31 = vector.broadcast %cst_14 : f32 to vector<18x1xf32>
    %32 = arith.mulf %30, %31 : vector<18x1xf32>
    %33 = vector.broadcast %32 : vector<18x1xf32> to vector<18x128xf32>
    %34 = arith.subf %8, %33 : vector<18x128xf32>
    %35 = vector.broadcast %7 : vector<1x128xf32> to vector<18x128xf32>
    %36 = arith.mulf %34, %35 : vector<18x128xf32>
    %37 = arith.mulf %36, %36 : vector<18x128xf32>
    %cst_15 = arith.constant dense<0.000000e+00> : vector<18xf32>
    %38 = vector.multi_reduction <add>, %37, %cst_15 [1] : vector<18x128xf32> to vector<18xf32>
    %39 = vector.shape_cast %38 : vector<18xf32> to vector<18x1xf32>
    %cst_16 = arith.constant 3.125000e-02 : f32
    %40 = vector.broadcast %cst_16 : f32 to vector<18x1xf32>
    %41 = arith.mulf %39, %40 : vector<18x1xf32>
    %cst_17 = arith.constant 9.99999974E-6 : f32
    %42 = vector.broadcast %cst_17 : f32 to vector<18x1xf32>
    %43 = arith.addf %41, %42 : vector<18x1xf32>
    %44 = math.rsqrt %43 : vector<18x1xf32>
    %45 = vector.broadcast %44 : vector<18x1xf32> to vector<18x128xf32>
    %46 = arith.mulf %36, %45 : vector<18x128xf32>
    %47 = vector.broadcast %11 : vector<1x128xf32> to vector<18x128xf32>
    %48 = arith.mulf %46, %47 : vector<18x128xf32>
    %49 = vector.broadcast %12 : vector<1x128xf32> to vector<18x128xf32>
    %50 = arith.addf %48, %49 : vector<18x128xf32>
    %51 = arith.truncf %50 : vector<18x128xf32> to vector<18x128xbf16>
    %cst_18 = arith.constant dense<0.000000e+00> : vector<18x384xf32>
    %52 = tpu.matmul %51, %22, %cst_18 {dimension_numbers = #tpu.dot_dimension_numbers<[1], [0], [0], [1], [0, 0, 1, 1], [], []>} : vector<18x128xbf16>, vector<128x384xbf16>, vector<18x384xf32> -> vector<18x384xf32>
    %53 = vector.extract_strided_slice %52 {offsets = [0, 0], sizes = [18, 128], strides = [1, 1]} : vector<18x384xf32> to vector<18x128xf32>
    %54 = vector.broadcast %13 : vector<1x128xf32> to vector<18x128xf32>
    %55 = arith.addf %53, %54 : vector<18x128xf32>
    %56 = vector.extract_strided_slice %52 {offsets = [0, 128], sizes = [18, 128], strides = [1, 1]} : vector<18x384xf32> to vector<18x128xf32>
    %57 = vector.broadcast %14 : vector<1x128xf32> to vector<18x128xf32>
    %58 = arith.addf %56, %57 : vector<18x128xf32>
    %59 = vector.extract_strided_slice %52 {offsets = [0, 256], sizes = [18, 128], strides = [1, 1]} : vector<18x384xf32> to vector<18x128xf32>
    %60 = vector.broadcast %15 : vector<1x128xf32> to vector<18x128xf32>
    %61 = arith.addf %59, %60 : vector<18x128xf32>
    %62 = arith.truncf %55 : vector<18x128xf32> to vector<18x128xbf16>
    %63 = arith.truncf %58 : vector<18x128xf32> to vector<18x128xbf16>
    %cst_19 = arith.constant dense<0.000000e+00> : vector<18x18xf32>
    %64 = tpu.matmul %62, %63, %cst_19 {dimension_numbers = #tpu.dot_dimension_numbers<[1], [1], [0], [0], [0, 0, 1, 0], [], []>} : vector<18x128xbf16>, vector<18x128xbf16>, vector<18x18xf32> -> vector<18x18xf32>
    %cst_20 = arith.constant 0.176776692 : f32
    %65 = vector.broadcast %cst_20 : f32 to vector<18x18xf32>
    %66 = arith.mulf %64, %65 : vector<18x18xf32>
    %67 = tpu.iota {dimensions = array<i32: 0>} : vector<18x18xi32>
    %68 = tpu.iota {dimensions = array<i32: 1>} : vector<18x18xi32>
    %c9_i32 = arith.constant 9 : i32
    %69 = vector.broadcast %c9_i32 : i32 to vector<18x18xi32>
    %70 = arith.cmpi sge, %67, %69 : vector<18x18xi32>
    %c9_i32_21 = arith.constant 9 : i32
    %71 = vector.broadcast %c9_i32_21 : i32 to vector<18x18xi32>
    %72 = arith.cmpi sge, %68, %71 : vector<18x18xi32>
    %73 = arith.xori %70, %72 : vector<18x18xi1>
    %cst_22 = arith.constant dense<true> : vector<18x18xi1>
    %74 = arith.xori %73, %cst_22 : vector<18x18xi1>
    %cst_23 = arith.constant -1.000000e+09 : f32
    %75 = vector.broadcast %cst_23 : f32 to vector<18x18xf32>
    %76 = arith.select %74, %66, %75 : vector<18x18xi1>, vector<18x18xf32>
    %cst_24 = arith.constant dense<0xFF800000> : vector<18xf32>
    %77 = vector.multi_reduction <maximumf>, %76, %cst_24 [1] : vector<18x18xf32> to vector<18xf32>
    %78 = vector.shape_cast %77 : vector<18xf32> to vector<18x1xf32>
    %79 = vector.broadcast %78 : vector<18x1xf32> to vector<18x18xf32>
    %80 = arith.subf %76, %79 : vector<18x18xf32>
    %81 = math.exp %80 : vector<18x18xf32>
    %cst_25 = arith.constant dense<0.000000e+00> : vector<18xf32>
    %82 = vector.multi_reduction <add>, %81, %cst_25 [1] : vector<18x18xf32> to vector<18xf32>
    %83 = vector.shape_cast %82 : vector<18xf32> to vector<18x1xf32>
    %84 = tpu.reciprocal %83 {approx = true} : vector<18x1xf32> -> vector<18x1xf32>
    %85 = vector.broadcast %84 : vector<18x1xf32> to vector<18x18xf32>
    %86 = arith.mulf %81, %85 : vector<18x18xf32>
    %87 = arith.truncf %86 : vector<18x18xf32> to vector<18x18xbf16>
    %88 = arith.truncf %61 : vector<18x128xf32> to vector<18x128xbf16>
    %cst_26 = arith.constant dense<0.000000e+00> : vector<18x128xf32>
    %89 = tpu.matmul %87, %88, %cst_26 {dimension_numbers = #tpu.dot_dimension_numbers<[1], [0], [0], [1], [0, 0, 1, 1], [], []>} : vector<18x18xbf16>, vector<18x128xbf16>, vector<18x128xf32> -> vector<18x128xf32>
    %90 = arith.truncf %89 : vector<18x128xf32> to vector<18x128xbf16>
    %cst_27 = arith.constant dense<0.000000e+00> : vector<18x128xf32>
    %91 = tpu.matmul %90, %25, %cst_27 {dimension_numbers = #tpu.dot_dimension_numbers<[1], [0], [0], [1], [0, 0, 1, 1], [], []>} : vector<18x128xbf16>, vector<128x128xbf16>, vector<18x128xf32> -> vector<18x128xf32>
    %92 = vector.broadcast %16 : vector<1x128xf32> to vector<18x128xf32>
    %93 = arith.addf %91, %92 : vector<18x128xf32>
    %94 = arith.addf %8, %93 : vector<18x128xf32>
    %cst_28 = arith.constant dense<0.000000e+00> : vector<18xf32>
    %95 = vector.multi_reduction <add>, %94, %cst_28 [1] : vector<18x128xf32> to vector<18xf32>
    %96 = vector.shape_cast %95 : vector<18xf32> to vector<18x1xf32>
    %cst_29 = arith.constant 3.125000e-02 : f32
    %97 = vector.broadcast %cst_29 : f32 to vector<18x1xf32>
    %98 = arith.mulf %96, %97 : vector<18x1xf32>
    %99 = vector.broadcast %98 : vector<18x1xf32> to vector<18x128xf32>
    %100 = arith.subf %94, %99 : vector<18x128xf32>
    %101 = vector.broadcast %7 : vector<1x128xf32> to vector<18x128xf32>
    %102 = arith.mulf %100, %101 : vector<18x128xf32>
    %103 = arith.mulf %102, %102 : vector<18x128xf32>
    %cst_30 = arith.constant dense<0.000000e+00> : vector<18xf32>
    %104 = vector.multi_reduction <add>, %103, %cst_30 [1] : vector<18x128xf32> to vector<18xf32>
    %105 = vector.shape_cast %104 : vector<18xf32> to vector<18x1xf32>
    %cst_31 = arith.constant 3.125000e-02 : f32
    %106 = vector.broadcast %cst_31 : f32 to vector<18x1xf32>
    %107 = arith.mulf %105, %106 : vector<18x1xf32>
    %cst_32 = arith.constant 9.99999974E-6 : f32
    %108 = vector.broadcast %cst_32 : f32 to vector<18x1xf32>
    %109 = arith.addf %107, %108 : vector<18x1xf32>
    %110 = math.rsqrt %109 : vector<18x1xf32>
    %111 = vector.broadcast %110 : vector<18x1xf32> to vector<18x128xf32>
    %112 = arith.mulf %102, %111 : vector<18x128xf32>
    %113 = vector.broadcast %17 : vector<1x128xf32> to vector<18x128xf32>
    %114 = arith.mulf %112, %113 : vector<18x128xf32>
    %115 = vector.broadcast %18 : vector<1x128xf32> to vector<18x128xf32>
    %116 = arith.addf %114, %115 : vector<18x128xf32>
    %117 = arith.truncf %116 : vector<18x128xf32> to vector<18x128xbf16>
    %cst_33 = arith.constant dense<0.000000e+00> : vector<18x128xf32>
    %118 = tpu.matmul %117, %26, %cst_33 {dimension_numbers = #tpu.dot_dimension_numbers<[1], [0], [0], [1], [0, 0, 1, 1], [], []>} : vector<18x128xbf16>, vector<128x128xbf16>, vector<18x128xf32> -> vector<18x128xf32>
    %119 = vector.broadcast %19 : vector<1x128xf32> to vector<18x128xf32>
    %120 = arith.addf %118, %119 : vector<18x128xf32>
    %cst_34 = arith.constant 5.000000e-01 : f32
    %121 = vector.broadcast %cst_34 : f32 to vector<18x128xf32>
    %122 = arith.mulf %121, %120 : vector<18x128xf32>
    %cst_35 = arith.constant 0.707106769 : f32
    %123 = vector.broadcast %cst_35 : f32 to vector<18x128xf32>
    %124 = arith.mulf %120, %123 : vector<18x128xf32>
    %125 = math.erf %124 : vector<18x128xf32>
    %cst_36 = arith.constant 1.000000e+00 : f32
    %126 = vector.broadcast %cst_36 : f32 to vector<18x128xf32>
    %127 = arith.addf %126, %125 : vector<18x128xf32>
    %128 = arith.mulf %122, %127 : vector<18x128xf32>
    %129 = arith.truncf %128 : vector<18x128xf32> to vector<18x128xbf16>
    %cst_37 = arith.constant dense<0.000000e+00> : vector<18x128xf32>
    %130 = tpu.matmul %129, %28, %cst_37 {dimension_numbers = #tpu.dot_dimension_numbers<[1], [0], [0], [1], [0, 0, 1, 1], [], []>} : vector<18x128xbf16>, vector<128x128xbf16>, vector<18x128xf32> -> vector<18x128xf32>
    %131 = vector.broadcast %20 : vector<1x128xf32> to vector<18x128xf32>
    %132 = arith.addf %130, %131 : vector<18x128xf32>
    %133 = arith.addf %94, %132 : vector<18x128xf32>
    %c0_38 = arith.constant 0 : index
    %c0_39 = arith.constant 0 : index
    %134 = vector.load %arg7[%c0_38, %c0_39] : memref<18x128xf32, #tpu.memory_space<vmem>>, vector<18x128xf32>
    tpu.vector_store %arg7[%c0_38, %c0_39], %133 {strides = array<i32>} : memref<18x128xf32, #tpu.memory_space<vmem>>, vector<18x128xf32>,
    %c1_i32 = arith.constant 1 : i32
    %135 = arith.cmpi eq, %arg0, %c1_i32 : i32
    %136 = arith.extui %135 : i1 to i32
    %c0_i32_40 = arith.constant 0 : i32
    %137 = arith.cmpi ne, %136, %c0_i32_40 : i32
    scf.if %137 {
      %c0_41 = arith.constant 0 : index
      %c0_42 = arith.constant 0 : index
      %138 = tpu.strided_load %arg7[%c0_41, %c0_42] {strides = array<i32: 9, 1>} : memref<18x128xf32, #tpu.memory_space<vmem>>, vector<2x128xf32>
      %139 = vector.extract_strided_slice %10 {offsets = [10, 0], sizes = [1, 128], strides = [1, 1]} : vector<16x128xf32> to vector<1x128xf32>
      %140 = vector.extract_strided_slice %10 {offsets = [11, 0], sizes = [1, 128], strides = [1, 1]} : vector<16x128xf32> to vector<1x128xf32>
      %cst_43 = arith.constant dense<0.000000e+00> : vector<2xf32>
      %141 = vector.multi_reduction <add>, %138, %cst_43 [1] : vector<2x128xf32> to vector<2xf32>
      %142 = vector.shape_cast %141 : vector<2xf32> to vector<2x1xf32>
      %cst_44 = arith.constant 3.125000e-02 : f32
      %143 = vector.broadcast %cst_44 : f32 to vector<2x1xf32>
      %144 = arith.mulf %142, %143 : vector<2x1xf32>
      %145 = vector.broadcast %144 : vector<2x1xf32> to vector<2x128xf32>
      %146 = arith.subf %138, %145 : vector<2x128xf32>
      %147 = vector.broadcast %7 : vector<1x128xf32> to vector<2x128xf32>
      %148 = arith.mulf %146, %147 : vector<2x128xf32>
      %149 = arith.mulf %148, %148 : vector<2x128xf32>
      %cst_45 = arith.constant dense<0.000000e+00> : vector<2xf32>
      %150 = vector.multi_reduction <add>, %149, %cst_45 [1] : vector<2x128xf32> to vector<2xf32>
      %151 = vector.shape_cast %150 : vector<2xf32> to vector<2x1xf32>
      %cst_46 = arith.constant 3.125000e-02 : f32
      %152 = vector.broadcast %cst_46 : f32 to vector<2x1xf32>
      %153 = arith.mulf %151, %152 : vector<2x1xf32>
      %cst_47 = arith.constant 9.99999974E-6 : f32
      %154 = vector.broadcast %cst_47 : f32 to vector<2x1xf32>
      %155 = arith.addf %153, %154 : vector<2x1xf32>
      %156 = math.rsqrt %155 : vector<2x1xf32>
      %157 = vector.broadcast %156 : vector<2x1xf32> to vector<2x128xf32>
      %158 = arith.mulf %148, %157 : vector<2x128xf32>
      %159 = vector.broadcast %139 : vector<1x128xf32> to vector<2x128xf32>
      %160 = arith.mulf %158, %159 : vector<2x128xf32>
      %161 = vector.broadcast %140 : vector<1x128xf32> to vector<2x128xf32>
      %162 = arith.addf %160, %161 : vector<2x128xf32>
      %c0_48 = arith.constant 0 : index
      %c0_49 = arith.constant 0 : index
      %163 = vector.load %arg6[%c0_48, %c0_49] : memref<2x128xf32, #tpu.memory_space<vmem>>, vector<2x128xf32>
      tpu.vector_store %arg6[%c0_48, %c0_49], %162 {strides = array<i32>} : memref<2x128xf32, #tpu.memory_space<vmem>>, vector<2x128xf32>,
    } else {
    }
    return
  }
  func.func @transform_0(%arg0: i32) -> (i32, i32) {
    %c0_i32 = arith.constant 0 : i32
    %c0_i32_0 = arith.constant 0 : i32
    %c0_i32_1 = arith.constant 0 : i32
    return %c0_i32, %c0_i32_0 : i32, i32
  }
  func.func @transform_1(%arg0: i32) -> (i32, i32, i32) {
    %c0_i32 = arith.constant 0 : i32
    %c0_i32_0 = arith.constant 0 : i32
    %c0_i32_1 = arith.constant 0 : i32
    return %arg0, %c0_i32, %c0_i32_0 : i32, i32, i32
  }
  func.func @transform_2(%arg0: i32) -> (i32, i32, i32) {
    %c0_i32 = arith.constant 0 : i32
    %c0_i32_0 = arith.constant 0 : i32
    %c0_i32_1 = arith.constant 0 : i32
    return %arg0, %c0_i32, %c0_i32_0 : i32, i32, i32
  }
  func.func @transform_3(%arg0: i32) -> (i32, i32, i32) {
    %c0_i32 = arith.constant 0 : i32
    %c0_i32_0 = arith.constant 0 : i32
    %c0_i32_1 = arith.constant 0 : i32
    return %arg0, %c0_i32, %c0_i32_0 : i32, i32, i32
  }
  func.func @transform_4(%arg0: i32) -> (i32, i32, i32) {
    %c0_i32 = arith.constant 0 : i32
    %c0_i32_0 = arith.constant 0 : i32
    %c0_i32_1 = arith.constant 0 : i32
    return %arg0, %c0_i32, %c0_i32_0 : i32, i32, i32
  }
  func.func @transform_5(%arg0: i32) -> (i32, i32) {
    %c0_i32 = arith.constant 0 : i32
    %c0_i32_0 = arith.constant 0 : i32
    %c0_i32_1 = arith.constant 0 : i32
    return %c0_i32, %c0_i32_0 : i32, i32
  }
}

</mosaic_0001>

<bundles_post_ra>
// kernel: tpu_custom_call.1
= control target key start
LH: loop header
LB: loop body
LE: loop exit
PB: predicated region body
PF: predicated region fallthrough
CT: control target
= control target key end

     0   :  { %s2537_s0 = inlined_call_operand.hbm [shape: f32[18,128], index: 0, kind: input, shape index: {}]   ;;  %s2538_s1 = inlined_call_operand.hbm [shape: bf16[2,128,384], index: 1, kind: input, shape index: {}]   ;;  %s2539_s2 = inlined_call_operand.hbm [shape: bf16[2,128,256], index: 2, kind: input, shape index: {}]   ;;  %s2540_s3 = inlined_call_operand.hbm [shape: bf16[2,128,128], index: 3, kind: input, shape index: {}]   ;;  %s2541_s4 = inlined_call_operand.hbm [shape: f32[2,16,128], index: 4, kind: input, shape index: {}]   ;;  %s2542_s5 = inlined_call_operand.hbm [shape: f32[2,128], index: 5, kind: output, shape index: {}]  }
   0x1   :  { %2546 = sst [smem:[#allocation17_spill]] %s2538_s1 }
   0x2   :  { %2547 = sst [smem:[#allocation18_spill]] %s2540_s3 }
   0x3   :  { %10 = vsyncpa [#allocation4], 0 }
   0x4   :  { %11 = vsyncpa [#allocation7], 0 }
   0x5   :  { %13 = vsyncpa [#allocation7 + $0x1], 0 }
   0x6   :  { %14 = vsyncpa [#allocation10], 0 }
   0x7   :  { %16 = vsyncpa [#allocation10 + $0x1], 0 }
   0x8   :  { %17 = vsyncpa [#allocation5], 0  ;;  %s2104_s18 = smov 0   ;;  %s2106_s19 = smov 0  }
   0x9   :  { %s2108_s20 = smov 0   ;;  %s2110_s21 = smov 0  }
   0xa LB: > { %s2125_s22 = sadd.s32 1, %s2057_s21   ;;  %s51_s23 = sadd.s32 1, %s2053_s20  ;;  %s2057_s21 = sphi %s2110_s21, %s2563_s21   ;;  %s2053_s20 = sphi %s2108_s20, %s2562_s20   ;;  %s2049_s19 = sphi %s2106_s19, %s2561_s19   ;;  %s2045_s18 = sphi %s2104_s18, %s2560_s18  }
   0xb   : > { %s48_s24 = ssub.s32 %s2057_s21, %s2125_s22  ;;  %p58_p0 = scmp.ne.s32.totalorder %s2053_s20, %s2049_s19 }
   0xc   : > { %p49_p1 = scmp.eq.s32.totalorder %s48_s24, 0  ;;  %p59_p2 = scmp.eq.s32.totalorder %s2057_s21, 0 }
   0xd   : > { %p1706_p3 = scmp.lt.s32.totalorder %s2057_s21, 2  ;;  %s200_s26 = sand.u32 1, %s2057_s21  }
   0xe   : > { %s2135_s25 = scalar_select %p49_p1, %s2053_s20, %s51_s23  }
   0xf   : > { %p60_p4 = por %p59_p2, %p58_p0  ;;  %s2139_s27 = sand.u32 1, %s2053_s20  }
  0x10   : > { %s1669_s28 = smul.u32 192, %s2139_s27  ;;  %s2549_s1 = sld [smem:[#allocation17_spill]] }
  0x11   : > { %p2142_p5 = pnand %p1706_p3, %p60_p4  ;;  %s1670_s30 = smul.u32 3072, %s2057_s21 }
  0x12   : > { %s204_s9 = scalar_lea.vmem [#allocation6], %s1669_s28  ;;  %s2156_s11 = scalar_lea.sflag [#allocation7], %s200_s26 }
  0x13   : > { %s211_s10 = sshll.u32 %s204_s9, 4  ;;  %p2162_p7 = pneg %p2142_p5  ;;  %s2152_s10 = int_to_ptr.vmem [resolvable:$true] %s211_s10 }
  0x16   : > { %s2150_s8 = scalar_lea.hbm %s2549_s1, %s1670_s30  ;;  %s1854_s16 = scalar_lea.hbm %s2549_s1, 6144 }
  0x17   : > { %s1849_s12 = scalar_lea.hbm %s2150_s8, 3072  ;;  %p1855_p10 = scmp.lt.s32.totalorder %s2150_s8, %s2549_s1 }
  0x18   : > { %p1850_p6 = scmp.ne.s32.totalorder %s2150_s8, %s1849_s12  ;;  %p1856_p11 = scmp.lt.s32.totalorder %s1854_s16, %s1849_s12 }
  0x1a   : > { %p1852_p8 = pnand %p2162_p7, %p1850_p6  ;;  %p1857_p12 = por %p1856_p11, %p1855_p10 }
  0x1c   : > { %p1853_p9 = pneg %p1852_p8 }
  0x1e   : > { %p1858_p13 = pnand %p1857_p12, %p1853_p9 }
  0x20   : > { %1861 = shalt.err (!%p1858_p13)
}
  0x21   : > { %s1862_s24 = scalar_lea.vmem %s2152_s10, 3072  ;;  %s2059_s28 = smov [#allocation6]  }
  0x22   : > { %p1863_p0 = scmp.ne.s32.totalorder %s2152_s10, %s1862_s24  ;;  %s1867_s30 = sshll.u32 %s2059_s28, 4  ;;  %s1868_s30 = int_to_ptr.vmem [resolvable:$false] %s1867_s30 }
  0x23   : > { %s1869_s6 = scalar_lea.vmem %s1868_s30, 6144  ;;  %p1870_p3 = scmp.lt.s32.totalorder %s2152_s10, %s1868_s30 }
  0x24   : > { %p1865_p1 = pnand %p1863_p0, %p2162_p7  ;;  %p1871_p4 = scmp.lt.s32.totalorder %s1869_s6, %s1862_s24 }
  0x26   : > { %p1866_p2 = pneg %p1865_p1  ;;  %p1872_p6 = por %p1871_p4, %p1870_p3 }
  0x28   : > { %p1873_p8 = pnand %p1872_p6, %p1866_p2 }
  0x2a   : > { %1876 = shalt.err (!%p1873_p8)
}
  0x2b   : > { %s2060_s7 = smov 192   ;;  %s2061_s9 = smov 12  }
  0x2c   : > { %1695 = dma.hbm_to_vmem [thread:$0]  (!%p2142_p5), %s2150_s8, 3072, %s2152_s10, %s2156_s11, %s2060_s7, %s2060_s7, %s2061_s9  }
  0x2d   : > { %s1453_s12 = sshll.u32 %s2139_s27, 6  ;;  %s1522_s14 = sshll.u32 %s2057_s21, 10 }
  0x2e   : > { %s2551_s3 = sld [smem:[#allocation18_spill]]  ;;  %s246_s23 = scalar_lea.vmem [#allocation9], %s1453_s12 }
  0x2f   : > { %s253_s24 = sshll.u32 %s246_s23, 4  ;;  %s2196_s28 = scalar_lea.sflag [#allocation10], %s200_s26  ;;  %s2192_s24 = int_to_ptr.vmem [resolvable:$true] %s253_s24 }
  0x34   : > { %s2190_s17 = scalar_lea.hbm %s2551_s3, %s1522_s14  ;;  %s1882_s6 = scalar_lea.hbm %s2551_s3, 2048 }
  0x35   : > { %s1877_s30 = scalar_lea.hbm %s2190_s17, 1024  ;;  %p1883_p12 = scmp.lt.s32.totalorder %s2190_s17, %s2551_s3 }
  0x36   : > { %p1878_p9 = scmp.ne.s32.totalorder %s2190_s17, %s1877_s30  ;;  %p1884_p13 = scmp.lt.s32.totalorder %s1882_s6, %s1877_s30 }
  0x38   : > { %p1880_p10 = pnand %p1878_p9, %p2162_p7  ;;  %p1885_p0 = por %p1884_p13, %p1883_p12 }
  0x3a   : > { %p1881_p11 = pneg %p1880_p10 }
  0x3c   : > { %p1886_p1 = pnand %p1885_p0, %p1881_p11 }
  0x3e   : > { %1889 = shalt.err (!%p1886_p1)
}
  0x3f   : > { %s1890_s26 = scalar_lea.vmem %s2192_s24, 1024  ;;  %s2062_s12 = smov [#allocation9]  }
  0x40   : > { %p1891_p2 = scmp.ne.s32.totalorder %s2192_s24, %s1890_s26  ;;  %s1895_s14 = sshll.u32 %s2062_s12, 4  ;;  %s1896_s14 = int_to_ptr.vmem [resolvable:$false] %s1895_s14 }
  0x41   : > { %s1897_s15 = scalar_lea.vmem %s1896_s14, 2048  ;;  %p1898_p6 = scmp.lt.s32.totalorder %s2192_s24, %s1896_s14 }
  0x42   : > { %p1893_p3 = pnand %p1891_p2, %p2162_p7  ;;  %p1899_p8 = scmp.lt.s32.totalorder %s1897_s15, %s1890_s26 }
  0x44   : > { %p1894_p4 = pneg %p1893_p3  ;;  %p1900_p9 = por %p1899_p8, %p1898_p6 }
  0x46   : > { %p1901_p10 = pnand %p1900_p9, %p1894_p4 }
  0x48   : > { %1904 = shalt.err (!%p1901_p10)
}
  0x49   : > { %s2063_s16 = smov 64   ;;  %s2064_s23 = smov 4  }
  0x4a   : > { %1701 = dma.hbm_to_vmem [thread:$0]  (!%p2142_p5), %s2190_s17, 1024, %s2192_s24, %s2196_s28, %s2063_s16, %s2063_s16, %s2064_s23  }
  0x4b   : > { %s2220_s30 = sadd.s32 4294967295, %s2057_s21   ;;  %p64_p11 = scmp.ne.s32.totalorder %s2049_s19, %s2045_s18 }
  0x4c   : > { %p2543_p12 = scmp.eq.s32.totalorder %s2220_s30, 0  ;;  %p1446_p13 = scmp.ge.s32.totalorder %s2057_s21, 1 }
  0x4d   : > { %p174_p0 = scmp.lt.s32.totalorder %s2057_s21, 3  ;;  %s2065_s17 = smov [#allocation3]  }
  0x4e   : > { %p2229_p1 = por %p2543_p12, %p64_p11  ;;  %s186_s24 = sshll.u32 %s2065_s17, 4  ;;  %s187_s24 = int_to_ptr.vmem [resolvable:$true] %s186_s24 }
  0x4f   : > { %p2234_p3 = pnand %p1446_p13, %p174_p0  ;;  %s1450_s18 = sshll.u32 %s2139_s27, 7 }
  0x50   : > { %s2552_s8 = scalar_select %p2229_p1, 1, 0 }
  0x51   : > { %s2553_s10 = scalar_select %p2234_p3, 1, 0 }
  0x52   : > { %p1688_p4 = pneg %p2234_p3  ;;  %s1521_s7 = sshll.u32 %s2057_s21, 11 }
  0x53   : > { %s225_s9 = scalar_lea.vmem [#allocation8], %s1450_s18  ;;  %s2251_s15 = scalar_lea.hbm %s2539_s2, %s1521_s7 }
  0x54   : > { %p2243_p6 = pnand %p1688_p4, %p2543_p12  ;;  %s232_s26 = sshll.u32 %s225_s9, 4  ;;  %s2263_s26 = int_to_ptr.vmem [resolvable:$true] %s232_s26 }
  0x55   : > { %s1916_s16 = scalar_lea.vmem %s187_s24, 384  ;;  %p1924_p13 = scmp.lt.s32.totalorder %s187_s24, %s187_s24 }
  0x56   : > { %p1907_p8 = pneg %p2243_p6  ;;  %p1917_p9 = scmp.ne.s32.totalorder %s187_s24, %s1916_s16 }
  0x57   : > { %p1925_p0 = scmp.lt.s32.totalorder %s1916_s16, %s1916_s16 }
  0x58   : > { %p1919_p10 = pnand %p1917_p9, %p1907_p8 }
  0x59   : > { %p1926_p4 = por %p1925_p0, %p1924_p13 }
  0x5a   : > { %p1920_p11 = pneg %p1919_p10 }
  0x5c   : > { %p1927_p2 = pnand %p1926_p4, %p1920_p11 }
  0x5e   : > { %1930 = shalt.err (!%p1927_p2)
}
  0x5f   : > { %s2066_s23 = smov 128   ;;  %s2067_s17 = smov 8  }
  0x60   : > { %1691 = dma.hbm_to_vmem [thread:$0]  (!%p2243_p6), %s2537_s0, 384, %s187_s24, [#allocation4], %s2066_s23, %s2066_s23, %s2067_s17  }
  0x61   : > { %s1456_s9 = sshll.u32 %s2139_s27, 4  ;;  %s1931_s12 = scalar_lea.hbm %s2251_s15, 2048 }
  0x62   : > { %p1932_p2 = scmp.ne.s32.totalorder %s2251_s15, %s1931_s12  ;;  %s1936_s1 = scalar_lea.hbm %s2539_s2, 4096 }
  0x63   : > { %p1937_p10 = scmp.lt.s32.totalorder %s2251_s15, %s2539_s2  ;;  %p1938_p11 = scmp.lt.s32.totalorder %s1936_s1, %s1931_s12 }
  0x64   : > { %p1934_p8 = pnand %p1932_p2, %p2162_p7 }
  0x65   : > { %p1939_p13 = por %p1938_p11, %p1937_p10 }
  0x66   : > { %p1935_p9 = pneg %p1934_p8 }
  0x68   : > { %p1940_p0 = pnand %p1939_p13, %p1935_p9 }
  0x6a   : > { %1943 = shalt.err (!%p1940_p0)
}
  0x6b   : > { %s1944_s24 = scalar_lea.vmem %s2263_s26, 2048  ;;  %s2068_s18 = smov [#allocation8]  }
  0x6c   : > { %p1945_p6 = scmp.ne.s32.totalorder %s2263_s26, %s1944_s24  ;;  %s1949_s7 = sshll.u32 %s2068_s18, 4  ;;  %s1950_s7 = int_to_ptr.vmem [resolvable:$false] %s1949_s7 }
  0x6d   : > { %s1951_s14 = scalar_lea.vmem %s1950_s7, 4096  ;;  %p1952_p8 = scmp.lt.s32.totalorder %s2263_s26, %s1950_s7 }
  0x6e   : > { %p1947_p4 = pnand %p1945_p6, %p2162_p7  ;;  %p1953_p12 = scmp.lt.s32.totalorder %s1951_s14, %s1944_s24 }
  0x70   : > { %p1948_p2 = pneg %p1947_p4  ;;  %p1954_p1 = por %p1953_p12, %p1952_p8 }
  0x72   : > { %p1955_p3 = pnand %p1954_p1, %p1948_p2 }
  0x74   : > { %1958 = shalt.err (!%p1955_p3)
}
  0x75   : > { %1698 = dma.hbm_to_vmem [thread:$0]  (!%p2142_p5), %s2251_s15, 2048, %s2263_s26, %s2156_s11, %s2066_s23, %s2066_s23, %s2067_s17  }
  0x76   : > { %s1523_s1 = sshll.u32 %s2057_s21, 8  ;;  %s267_s6 = scalar_lea.vmem [#allocation11], %s1456_s9 }
  0x77   : > { %s2294_s16 = scalar_lea.hbm %s2541_s4, %s1523_s1  ;;  %s274_s24 = sshll.u32 %s267_s6, 4  ;;  %s275_s24 = int_to_ptr.vmem [resolvable:$true] %s274_s24 }
  0x78   : > { %s1959_s18 = scalar_lea.hbm %s2294_s16, 256  ;;  %s1964_s21 = scalar_lea.hbm %s2541_s4, 512 }
  0x79   : > { %p1960_p12 = scmp.ne.s32.totalorder %s2294_s16, %s1959_s18  ;;  %p1965_p9 = scmp.lt.s32.totalorder %s2294_s16, %s2541_s4 }
  0x7a   : > { %p1966_p10 = scmp.lt.s32.totalorder %s1964_s21, %s1959_s18 }
  0x7b   : > { %p1962_p1 = pnand %p1960_p12, %p2162_p7 }
  0x7c   : > { %p1967_p11 = por %p1966_p10, %p1965_p9 }
  0x7d   : > { %p1963_p3 = pneg %p1962_p1 }
  0x7f   : > { %p1968_p13 = pnand %p1967_p11, %p1963_p3 }
  0x81   : > { %1971 = shalt.err (!%p1968_p13)
}
  0x82   : > { %s1972_s27 = scalar_lea.vmem %s275_s24, 256  ;;  %s2069_s9 = smov [#allocation11]  }
  0x83   : > { %p1973_p0 = scmp.ne.s32.totalorder %s275_s24, %s1972_s27  ;;  %s1977_s14 = sshll.u32 %s2069_s9, 4  ;;  %s1978_s14 = int_to_ptr.vmem [resolvable:$false] %s1977_s14 }
  0x84   : > { %s1979_s1 = scalar_lea.vmem %s1978_s14, 512  ;;  %p1980_p2 = scmp.lt.s32.totalorder %s275_s24, %s1978_s14 }
  0x85   : > { %p1975_p6 = pnand %p1973_p0, %p2162_p7  ;;  %p1981_p8 = scmp.lt.s32.totalorder %s1979_s1, %s1972_s27 }
  0x87   : > { %p1976_p4 = pneg %p1975_p6  ;;  %p1982_p12 = por %p1981_p8, %p1980_p2 }
  0x89   : > { %p1983_p1 = pnand %p1982_p12, %p1976_p4 }
  0x8b   : > { %1986 = shalt.err (!%p1983_p1)
}
  0x8c   : > { %1704 = dma.hbm_to_vmem [thread:$0]  (!%p2142_p5), %s2294_s16, 256, %s275_s24, %s2196_s28, %s2066_s23, %s2066_s23, %s2067_s17  }
  0x8d   : > { %p2555_p7 = scmp.ne.s32.totalorder %s2553_s10, 0 }
  0x8e   : > { %p2556_p3 = scmp.eq.s32.totalorder (!%p2555_p7), %s2220_s30, 0 }
  0x8f   : > { %286 = sbr.rel (%p2555_p7) target bundleno = 2706 (0xa92), region = 40 }
  0x94   : > { %2028 = dma.done.wait (%p2556_p3), [#allocation4], 384   ;;  %p2557_p9 = pmov %p2556_p3 }
  0x95   : > { %s292_s13 = sand.u32 1, %s2220_s30   ;;  %s294_s29 = sand.u32 1, %s2049_s19  }
  0x96   : > { %2030 = vsyncadd (%p2557_p9), [#allocation4], 4294966912  ;;  %s1671_s3 = smul.u32 192, %s294_s29  ;;  %s293_s12 = scalar_lea.sflag [#allocation7], %s292_s13 }
  0x97   : > { %p2558_p10 = scmp.ne.s32.totalorder %s2552_s8, 0 }
  0x98   : > { %s2326_s6 = scalar_lea.vmem [#allocation6], %s1671_s3 }
  0x99   : > { %2032 = dma.done.wait (%p2558_p10), %s293_s12, 5120  }
  0x9a   : > { %2034 = vsyncadd (%p2558_p10), %s293_s12, 4294962176  ;;  %s1461_s28 = sshll.u32 %s294_s29, 7  ;;  %s1462_s10 = sshll.u32 %s294_s29, 6 }
  0x9b   : > { %s2332_s23 = scalar_lea.vmem [#allocation8], %s1461_s28  ;;  %s311_s17 = scalar_lea.sflag [#allocation10], %s292_s13 }
  0x9c   : > { %s2334_s16 = scalar_lea.vmem [#allocation9], %s1462_s10 }
  0x9d   : > { %2036 = dma.done.wait (%p2558_p10), %s311_s17, 1280  }
  0x9e   : > { %2038 = vsyncadd (%p2558_p10), %s311_s17, 4294966016  ;;  %s1463_s24 = sshll.u32 %s294_s29, 4  ;;  %p2559_p5 = scmp.ne.s32.totalorder %s2220_s30, 0 }
  0x9f   : > { %s2340_s18 = scalar_lea.vmem [#allocation11], %s1463_s24 }
  0xa0   : > { %364 = sbr.rel (%p2559_p5) target bundleno = 168 (0xa8), region = 64 }
  0xa5   : > { %v365_v0 = vld [vmem:[#allocation3] sm:$0xff]  ;;  %v366_v1 = vld [vmem:[#allocation3 + $0x8] sm:$0xff]  ;;  %v367_v2 = vld [vmem:[#allocation3 + $0x10] sm:$0x3] }
  0xa6   : > { %368 = vst [vmem:[#allocation2] sm:$0xff] %v365_v0  ;;  %369 = vst [vmem:[#allocation2 + $0x8] sm:$0xff] %v366_v1 }
  0xa7   : > { %370 = vst [vmem:[#allocation2 + $0x10] sm:$0x3] %v367_v2 }
  0xa8 PF: > { %vm449_vm0 = vcmask 1041408   ;;  %v1753_v7 = vld [vmem:[%s2326_s6 + $0xac] ss:$12 sps:$4 sm:$0xff]   ;;  %v1755_v8 = vld [vmem:[%s2326_s6 + $0xa8] ss:$12 sps:$4 sm:$0xff]   ;;  %v371_v10 = vlaneseq  ;;  %v2070_v16 = vmov 0.0  }
  0xa9   : > { %v1756_v9 = vld [vmem:[%s2326_s6 + $0xb0] ss:$12 sps:$4 sm:$0xff]   ;;  %628 = vmatprep.subr.bf16.mxu0 %v1753_v7  ;;  %v1757_v30 = vld [vmem:[%s2326_s6 + $0x94] ss:$12 sps:$4 sm:$0xff]   ;;  %v1760_v32 = vld [vmem:[%s2326_s6 + $0x98] ss:$12 sps:$4 sm:$0xff]  }
  0xaa   : > { %1572 = vmatprep.subr.bf16.mxu1 %v1756_v9  ;;  %629 = vmatpush1.bf16.msra.mxu0 %v1755_v8  ;;  %v2358_v11 = vand.u32 127, %v371_v10  ;;  %v1759_v31 = vld [vmem:[%s2326_s6 + $0x90] ss:$12 sps:$4 sm:$0xff]   ;;  %v1763_v34 = vld [vmem:[%s2326_s6 + $0x78] ss:$12 sps:$4 sm:$0xff]   ;;  %v2071_v44 = vmov 0  }
  0xab   : > { %1573 = vmatpush3.bf16.msra.mxu1 %v1756_v9  ;;  %630 = vmatprep.subr.bf16.mxu0 %v1757_v30  ;;  %v1761_v33 = vld [vmem:[%s2326_s6 + $0x7c] ss:$12 sps:$4 sm:$0xff]   ;;  %v1764_v35 = vld [vmem:[%s2326_s6 + $0x80] ss:$12 sps:$4 sm:$0xff]   ;;  %v1765_v36 = vld [vmem:[%s2326_s6 + $0x64] ss:$12 sps:$4 sm:$0xff]  }
  0xac   : > { %vm373_vm1 = vcmp.lt.s32.totalorder %v2358_v11, 32  ;;  %1574 = vmatprep.subr.bf16.mxu1 %v1760_v32  ;;  %v1767_v37 = vld [vmem:[%s2326_s6 + $0x60] ss:$12 sps:$4 sm:$0xff]   ;;  %v1768_v38 = vld [vmem:[%s2326_s6 + $0x68] ss:$12 sps:$4 sm:$0xff]   ;;  %660 = vmatprep.mubr.bf16.mxu0 %v2071_v44  ;;  %v2404_v61 = vshrl.u32 %v371_v10, 7 }
  0xad   : > { %v2344_v3 = vld [vmem:[#allocation2] sm:$0xff]  ;;  %v2348_v5 = vld [vmem:[#allocation2 + $0x8] sm:$0xff]  ;;  %v2361_v17 = vsel %vm373_vm1, 1.0, %v2070_v16  ;;  %v1780_v47 = vld [vmem:[%s2326_s6 + $0x20] ss:$12 sps:$4 sm:$0xff]   ;;  %vm865_vm2 = vcmask 1040384  }
  0xae   : > { %v2346_v4 = vld [vmem:[#allocation2 + $0x10] sm:$0x3]  ;;  %445 = vadd.xlane.f32.xlu0 %v2344_v3  ;;  %631 = vmatpush1.bf16.msra.mxu0 %v1759_v31  ;;  %v1769_v39 = vld [vmem:[%s2326_s6 + $0x4c] ss:$12 sps:$4 sm:$0xff]   ;;  %v1772_v40 = vld [vmem:[%s2326_s6 + $0x50] ss:$12 sps:$4 sm:$0xff]  }
  0xaf   : > { %v450_v6 = vsel %vm449_vm0, %v2346_v4, 0.0  ;;  %1575 = vmatpush3.bf16.msra.mxu1 %v1760_v32  ;;  %632 = vmatprep.subr.bf16.mxu0 %v1761_v33  ;;  %v1771_v41 = vld [vmem:[%s2326_s6 + $0x48] ss:$12 sps:$4 sm:$0xff]   ;;  %v1776_v43 = vld [vmem:[%s2326_s6 + $0x38] ss:$12 sps:$4 sm:$0xff]   ;;  %v486_v62 = vsub.s32 0, %v2404_v61 }
  0xb0   : > { %451 = vadd.xlane.f32.xlu1 %v450_v6  ;;  %1576 = vmatprep.subr.bf16.mxu1 %v1764_v35  ;;  %v1773_v42 = vld [vmem:[%s2326_s6 + $0x34] ss:$12 sps:$4 sm:$0xff]   ;;  %v1775_v45 = vld [vmem:[%s2326_s6 + $0x30] ss:$12 sps:$4 sm:$0xff]   ;;  %v1779_v48 = vld [vmem:[%s2326_s6 + $0x18] ss:$12 sps:$4 sm:$0xff]  }
  0xb1   : > { %v1777_v46 = vld [vmem:[%s2326_s6 + $0x1c] ss:$12 sps:$4 sm:$0xff]   ;;  %v1781_v49 = vld [vmem:[%s2326_s6 + $0x4] ss:$12 sps:$4 sm:$0xff]   ;;  %v1783_v51 = vld [vmem:[%s2326_s6] ss:$12 sps:$4 sm:$0xff]  }
  0xb2   : > { %447 = vadd.xlane.f32.xlu0 %v2348_v5  ;;  %633 = vmatpush1.bf16.msra.mxu0 %v1763_v34  ;;  %v1784_v50 = vld [vmem:[%s2326_s6 + $0x8] ss:$12 sps:$4 sm:$0xff]   ;;  %v493_v6 = vsub.s32 1, %v2404_v61  ;;  %v736_v30 = vsub.s32 3, %v2404_v61  ;;  %vm810_vm3 = vcmp.ge.s32.totalorder %v2358_v11, 9  ;;  %vm2072_vm5 = vmmov 1  }
  0xb3   : > { %1577 = vmatpush3.bf16.msra.mxu1 %v1764_v35  ;;  %634 = vmatprep.subr.bf16.mxu0 %v1765_v36  ;;  %v2408_v63 = vld [vmem:[%s2340_s18] sm:$0xff]  ;;  %vm813_vm6 = vmxor %vm2072_vm5, %vm810_vm3  ;;  %vm820_vm8 = vcmask 146432   ;;  %vm827_vm12 = vcmask 140288   ;;  %p1516_p11 = scmp.ne.s32.totalorder %s2220_s30, 1 }
  0xb4   : > { %1578 = vmatprep.subr.bf16.mxu1 %v1768_v38  ;;  %v487_v2 = vrot.slane %v2408_v63, %v486_v62  ;;  %v494_v10 = vrot.slane %v2408_v63, %v493_v6  ;;  %v737_v36 = vrot.slane %v2408_v63, %v736_v30  ;;  %vm814_vm7 = vmxor %vm810_vm3, %vm2072_vm5 }
  0xb5   : > { %vm816_vm10 = vmxor %vm813_vm6, %vm2072_vm5 }
  0xb6   : > { %635 = vmatpush1.bf16.msra.mxu0 %v1767_v37 }
  0xb7   : > { %1579 = vmatpush3.bf16.msra.mxu1 %v1768_v38  ;;  %636 = vmatprep.subr.bf16.mxu0 %v1769_v39  ;;  %v743_v38 = vsub.s32 4, %v2404_v61 }
  0xb8   : > { %1580 = vmatprep.subr.bf16.mxu1 %v1772_v40 }
  0xba   : > { %637 = vmatpush1.bf16.msra.mxu0 %v1771_v41 }
  0xbb   : > { %1581 = vmatpush3.bf16.msra.mxu1 %v1772_v40  ;;  %638 = vmatprep.subr.bf16.mxu0 %v1773_v42 }
  0xbc   : > { %1582 = vmatprep.subr.bf16.mxu1 %v1776_v43 }
  0xbe   : > { %639 = vmatpush1.bf16.msra.mxu0 %v1775_v45  ;;  %v744_v45 = vrot.slane %v2408_v63, %v743_v38 }
  0xbf   : > { %1583 = vmatpush3.bf16.msra.mxu1 %v1776_v43  ;;  %640 = vmatprep.subr.bf16.mxu0 %v1777_v46 }
  0xc0   : > { %1584 = vmatprep.subr.bf16.mxu1 %v1780_v47 }
  0xc2   : > { %641 = vmatpush1.bf16.msra.mxu0 %v1779_v48 }
  0xc3   : > { %1585 = vmatpush3.bf16.msra.mxu1 %v1780_v47  ;;  %642 = vmatprep.subr.bf16.mxu0 %v1781_v49 }
  0xc4   : > { %1586 = vmatprep.subr.bf16.mxu1 %v1784_v50 }
  0xc6   : > { %643 = vmatpush1.bf16.msra.mxu0 %v1783_v51 }
  0xc7   : > { %1587 = vmatpush3.bf16.msra.mxu1 %v1784_v50 }
 0x137   : > { %v446_v12 = vpop.xlane.xlu0 %445 }
 0x138   : > { %v453_v13 = vmul.f32 0.03125, %v446_v12 }
 0x139   : > { %v452_v14 = vpop.xlane.xlu1 %451 }
 0x13a   : > { %v455_v15 = vmul.f32 0.03125, %v452_v14  ;;  %v456_v18 = vsub.f32 %v2344_v3, %v453_v13 }
 0x13b   : > { %v448_v20 = vpop.xlane.xlu0 %447 }
 0x13c   : > { %v458_v19 = vsub.f32 %v2346_v4, %v455_v15  ;;  %v454_v21 = vmul.f32 0.03125, %v448_v20  ;;  %v2366_v22 = vmul.f32 %v2361_v17, %v456_v18 }
 0x13e   : > { %v2369_v23 = vmul.f32 %v2361_v17, %v458_v19  ;;  %v457_v24 = vsub.f32 %v2348_v5, %v454_v21  ;;  %v462_v25 = vmul.f32 %v2366_v22, %v2366_v22 }
 0x140   : > { %v464_v26 = vmul.f32 %v2369_v23, %v2369_v23  ;;  %465 = vadd.xlane.f32.xlu1 %v462_v25  ;;  %v2377_v27 = vmul.f32 %v2361_v17, %v457_v24 }
 0x142   : > { %v469_v28 = vsel %vm449_vm0, %v464_v26, 0.0  ;;  %v463_v29 = vmul.f32 %v2377_v27, %v2377_v27 }
 0x144   : > { %467 = vadd.xlane.f32.xlu0 %v463_v29  ;;  %470 = vadd.xlane.f32.xlu1 %v469_v28 }
 0x1c9   : > { %v466_v52 = vpop.xlane.xlu1 %465 }
 0x1ca   : > { %v472_v53 = vmul.f32 0.03125, %v466_v52 }
 0x1cc   : > { %v475_v54 = vadd.f32 1e-05, %v472_v53 }
 0x1cd   : > { %v468_v55 = vpop.xlane.xlu0 %467  ;;  %v471_v56 = vpop.xlane.xlu1 %470 }
 0x1ce   : > { %1817 = vrsqrt.f32 %v475_v54  ;;  %v473_v57 = vmul.f32 0.03125, %v468_v55  ;;  %v474_v58 = vmul.f32 0.03125, %v471_v56  ;;  %v805_v56 = vadd.s32 8, %v2404_v61 }
 0x1d0   : > { %v476_v59 = vadd.f32 1e-05, %v473_v57  ;;  %v477_v60 = vadd.f32 1e-05, %v474_v58  ;;  %vm808_vm4 = vcmp.ge.s32.totalorder %v805_v56, 9  ;;  %v921_v56 = vsub.s32 5, %v2404_v61 }
 0x1d1   : > { %vm812_vm9 = vmxor %vm808_vm4, %vm810_vm3 }
 0x1d2   : > { %1819 = vrsqrt.f32 %v476_v59  ;;  %vm815_vm11 = vmxor %vm812_vm9, %vm2072_vm5 }
 0x1d3   : > { %1821 = vrsqrt.f32 %v477_v60 }
 0x1db   : > { %v1818_v0 = vpop.eup %1817 }
 0x1dc   : > { %v481_v1 = vmul.f32 %v1818_v0, %v2366_v22  ;;  %v729_v22 = vsub.s32 2, %v2404_v61 }
 0x1de   : > { %v488_v12 = vmul.f32 %v487_v2, %v481_v1  ;;  %v730_v25 = vrot.slane %v2408_v63, %v729_v22 }
 0x1df   : > { %v1820_v7 = vpop.eup %1819 }
 0x1e0   : > { %v1822_v8 = vpop.eup %1821  ;;  %v482_v9 = vmul.f32 %v1820_v7, %v2377_v27  ;;  %v495_v16 = vadd.f32 %v494_v10, %v488_v12 }
 0x1e1   : > { %v483_v13 = vmul.f32 %v1822_v8, %v2369_v23 }
 0x1e2   : > { %v489_v14 = vmul.f32 %v487_v2, %v482_v9 }
 0x1e3   : > { %v490_v15 = vmul.f32 %v487_v2, %v483_v13 }
 0x1e4   : > { %v496_v18 = vadd.f32 %v494_v10, %v489_v14 }
 0x1e5   : > { %v497_v19 = vadd.f32 %v494_v10, %v490_v15 }
 0x1e6   : > { %v498_v20 = vpack.c.bf16 %v496_v18, %v495_v16 }
 0x1e7   : > { %v499_v21 = vpack.c.bf16 %v497_v19, %v497_v19 }
 0x1e8   : > { %661 = vmatmul.mubr.bf16.vlgmr.msra.gmra.mxu0 %v498_v20  ;;  %1588 = vmatprep.mubr.bf16.mxu1 %v498_v20 }
 0x1e9   : > { %1589 = vmatmul.mubr.bf16.vlgmr.msra.gmra.mxu1 %v499_v21  ;;  %670 = vmatprep.mubr.bf16.mxu0 %v2071_v44 }
 0x1f0   : > { %671 = vmatmul.mubr.bf16.gmra.mxu0 %v499_v21 }
 0x2a8   : > { %v662_v24 = vpop.f32.mrf.mxu0 }
 0x2a9   : > { %v1590_v23 = vpop.f32.mrf.mxu1  ;;  %v731_v29 = vadd.f32 %v730_v25, %v662_v24 }
 0x2aa   : > { %v664_v26 = vpop.f32.mrf.mxu0  ;;  %v747_v47 = vadd.f32 %v1590_v23, %v744_v45 }
 0x2ab   : > { %v713_v27 = vpop.f32.mrf.mxu1  ;;  %v738_v42 = vadd.f32 %v737_v36, %v664_v26 }
 0x2ac   : > { %v666_v28 = vpop.f32.mrf.mxu0  ;;  %v858_v48 = vpack.c.bf16 %v747_v47, %v747_v47  ;;  %v745_v52 = vadd.f32 %v744_v45, %v713_v27 }
 0x2ad   : > { %v732_v31 = vadd.f32 %v730_v25, %v666_v28  ;;  %v1591_v32 = vpop.f32.mrf.mxu1 }
 0x2ae   : > { %v668_v33 = vpop.f32.mrf.mxu0  ;;  %v867_v54 = vsel %vm865_vm2, %v858_v48, 0  ;;  %v1787_v32 = vld [vmem:[%s2332_s23 + $0x60] ss:$8 sps:$4 sm:$0xff]  }
 0x2af   : > { %v748_v34 = vpack.c.bf16 %v732_v31, %v731_v29  ;;  %v739_v39 = vadd.f32 %v737_v36, %v668_v33  ;;  %v716_v49 = vpop.f32.mrf.mxu1  ;;  %v1785_v31 = vld [vmem:[%s2332_s23 + $0x70] ss:$8 sps:$4 sm:$0xff]  }
 0x2b0   : > { %v672_v35 = vpop.f32.mrf.mxu0  ;;  %v746_v51 = vadd.f32 %v744_v45, %v716_v49  ;;  %1608 = vmatprep.subr.bf16.mxu1 %v1785_v31  ;;  %v1789_v33 = vld [vmem:[%s2332_s23 + $0x50] ss:$8 sps:$4 sm:$0xff]   ;;  %v1799_v49 = vld [vmem:[%s2332_s23] ss:$8 sps:$4 sm:$0xff]  }
 0x2b1   : > { %1596 = vmatprep.mubr.bf16.mxu0 %v748_v34  ;;  %v750_v46 = vpack.c.bf16 %v739_v39, %v738_v42  ;;  %v733_v50 = vadd.f32 %v730_v25, %v672_v35  ;;  %1609 = vmatpush3.bf16.msra.mxu1 %v1785_v31  ;;  %v1791_v34 = vld [vmem:[%s2332_s23 + $0x40] ss:$8 sps:$4 sm:$0xff]   ;;  %v1793_v35 = vld [vmem:[%s2332_s23 + $0x30] ss:$8 sps:$4 sm:$0xff]   ;;  %v1804_v31 = vld [vmem:[%s2332_s23 + $0x44] ss:$8 sps:$4 sm:$0xff]  }
 0x2b2   : > { %v674_v37 = vpop.f32.mrf.mxu0  ;;  %v857_v55 = vpack.c.bf16 %v746_v51, %v745_v52  ;;  %1610 = vmatprep.subr.bf16.mxu1 %v1787_v32 }
 0x2b3   : > { %v740_v40 = vadd.f32 %v737_v36, %v674_v37  ;;  %v749_v53 = vpack.c.bf16 %v733_v50, %v733_v50  ;;  %v1795_v36 = vld [vmem:[%s2332_s23 + $0x20] ss:$8 sps:$4 sm:$0xff]  }
 0x2b4   : > { %v676_v41 = vpop.f32.mrf.mxu0 }
 0x2b5   : > { %v751_v43 = vpack.c.bf16 %v740_v40, %v740_v40  ;;  %1611 = vmatpush3.bf16.msra.mxu1 %v1787_v32  ;;  %v1805_v32 = vld [vmem:[%s2332_s23 + $0x34] ss:$8 sps:$4 sm:$0xff]  }
 0x2b6   : > { %v677_v44 = vpop.f32.mrf.mxu0  ;;  %1612 = vmatprep.subr.bf16.mxu1 %v1789_v33 }
 0x2b7   : > { %1592 = vmatprep.subr.bf16.mxu0 %v751_v43 }
 0x2b8   : > { %1593 = vmatpush3.bf16.xpose.msra.mxu0 %v751_v43 }
 0x2b9   : > { %1594 = vmatprep.subr.bf16.mxu0 %v750_v46  ;;  %1613 = vmatpush3.bf16.msra.mxu1 %v1789_v33  ;;  %v1806_v33 = vld [vmem:[%s2332_s23 + $0x24] ss:$8 sps:$4 sm:$0xff]  }
 0x2ba   : > { %1614 = vmatprep.subr.bf16.mxu1 %v1791_v34 }
 0x2bd   : > { %1615 = vmatpush3.bf16.msra.mxu1 %v1791_v34  ;;  %v1807_v34 = vld [vmem:[%s2332_s23 + $0x14] ss:$8 sps:$4 sm:$0xff]  }
 0x2be   : > { %1616 = vmatprep.subr.bf16.mxu1 %v1793_v35 }
 0x2c0   : > { %1595 = vmatpush3.bf16.xpose.msra.mxu0 %v750_v46 }
 0x2c1   : > { %1668 = vmatprep.subr.msk.bf16.mxu0 %vm865_vm2, %v858_v48  ;;  %1617 = vmatpush3.bf16.msra.mxu1 %v1793_v35  ;;  %v1797_v48 = vld [vmem:[%s2332_s23 + $0x10] ss:$8 sps:$4 sm:$0xff]   ;;  %v1808_v35 = vld [vmem:[%s2332_s23 + $0x4] ss:$8 sps:$4 sm:$0xff]  }
 0x2c2   : > { %1618 = vmatprep.subr.bf16.mxu1 %v1795_v36 }
 0x2c5   : > { %1619 = vmatpush3.bf16.msra.mxu1 %v1795_v36 }
 0x2c6   : > { %1620 = vmatprep.subr.bf16.mxu1 %v1797_v48 }
 0x2c7   : > { %1597 = vmatmul.mubr.bf16.vlgmr.msra.gmra.mxu0 %v749_v53 }
 0x2c8   : > { %1601 = vmatpush3.bf16.msra.mxu0 %v867_v54 }
 0x2c9   : > { %1602 = vmatprep.subr.bf16.mxu0 %v857_v55  ;;  %1621 = vmatpush3.bf16.msra.mxu1 %v1797_v48 }
 0x2ca   : > { %1622 = vmatprep.subr.bf16.mxu1 %v1799_v49 }
 0x2cc   : > { %1603 = vmatpush3.bf16.msra.mxu0 %v857_v55 }
 0x2cd   : > { %1623 = vmatpush3.bf16.msra.mxu1 %v1799_v49  ;;  %v1069_v49 = vsub.s32 7, %v2404_v61 }
 0x387   : > { %v1598_v57 = vpop.f32.mrf.mxu0 }
 0x388   : > { %v802_v59 = vmul.f32 0.17677669, %v1598_v57  ;;  %v922_v57 = vrot.slane %v2408_v63, %v921_v56 }
 0x389   : > { %v786_v58 = vpop.f32.mrf.mxu0 }
 0x38a   : > { %v800_v60 = vmul.f32 0.17677669, %v786_v58  ;;  %v819_v11 = vsel %vm816_vm10, %v802_v59, -1e+09 }
 0x38b   : > { %v1599_v0 = vpop.f32.mrf.mxu0  ;;  %v828_v12 = vsel %vm827_vm12, %v819_v11, -inf }
 0x38c   : > { %v817_v1 = vsel %vm814_vm7, %v800_v60, -1e+09 }
 0x38d   : > { %v789_v2 = vpop.f32.mrf.mxu0  ;;  %v821_v7 = vsel %vm820_vm8, %v817_v1, -inf }
 0x38e   : > { %v801_v8 = vmul.f32 0.17677669, %v789_v2  ;;  %822 = vmax.xlane.f32.xlu0 %v821_v7 }
 0x390   : > { %v818_v9 = vsel %vm815_vm11, %v801_v8, -1e+09 }
 0x391   : > { %v824_v10 = vsel %vm820_vm8, %v818_v9, -inf }
 0x392   : > { %829 = vmax.xlane.f32.xlu0 %v828_v12  ;;  %825 = vmax.xlane.f32.xlu1 %v824_v10  ;;  %v1801_v10 = vld [vmem:[%s2332_s23 + $0x74] ss:$8 sps:$4 sm:$0xff]  }
 0x393   : > { %1628 = vmatprep.subr.bf16.mxu0 %v1801_v10 }
 0x417   : > { %v823_v13 = vpop.xlane.xlu0 %822 }
 0x418   : > { %v831_v14 = vsub.f32 %v817_v1, %v823_v13 }
 0x41a   : > { %v834_v15 = vmul.f32 1.442695, %v831_v14 }
 0x41b   : > { %v830_v16 = vpop.xlane.xlu0 %829  ;;  %v826_v18 = vpop.xlane.xlu1 %825 }
 0x41c   : > { %1823 = vpow2.f32 %v834_v15  ;;  %v833_v19 = vsub.f32 %v819_v11, %v830_v16  ;;  %v832_v20 = vsub.f32 %v818_v9, %v826_v18 }
 0x41e   : > { %v838_v21 = vmul.f32 1.442695, %v833_v19  ;;  %v836_v24 = vmul.f32 1.442695, %v832_v20 }
 0x420   : > { %1825 = vpow2.f32 %v838_v21 }
 0x421   : > { %1827 = vpow2.f32 %v836_v24 }
 0x429   : > { %v1824_v25 = vpop.eup %1823 }
 0x42a   : > { %v840_v23 = vsel %vm820_vm8, %v1824_v25, 0.0 }
 0x42b   : > { %841 = vadd.xlane.f32.xlu1 %v840_v23 }
 0x42d   : > { %v1826_v26 = vpop.eup %1825 }
 0x42e   : > { %v1828_v27 = vpop.eup %1827  ;;  %v846_v28 = vsel %vm827_vm12, %v1826_v26, 0.0 }
 0x42f   : > { %847 = vadd.xlane.f32.xlu1 %v846_v28  ;;  %v843_v29 = vsel %vm820_vm8, %v1828_v27, 0.0  ;;  %v1802_v28 = vld [vmem:[%s2332_s23 + $0x64] ss:$8 sps:$4 sm:$0xff]  }
 0x430   : > { %844 = vadd.xlane.f32.xlu0 %v843_v29  ;;  %v1803_v29 = vld [vmem:[%s2332_s23 + $0x54] ss:$8 sps:$4 sm:$0xff]  }
 0x4b4   : > { %v842_v37 = vpop.xlane.xlu1 %841 }
 0x4b5   : > { %1829 = vrcp.f32 %v842_v37 }
 0x4b8   : > { %v848_v38 = vpop.xlane.xlu1 %847 }
 0x4b9   : > { %v845_v39 = vpop.xlane.xlu0 %844  ;;  %1831 = vrcp.f32 %v848_v38 }
 0x4ba   : > { %1833 = vrcp.f32 %v845_v39 }
 0x4c2   : > { %v1830_v40 = vpop.eup %1829 }
 0x4c3   : > { %v852_v44 = vmul.f32 %v1830_v40, %v1824_v25 }
 0x4c6   : > { %v1832_v41 = vpop.eup %1831 }
 0x4c7   : > { %v1834_v42 = vpop.eup %1833  ;;  %v854_v43 = vmul.f32 %v1832_v41, %v1826_v26 }
 0x4c8   : > { %v853_v45 = vmul.f32 %v1834_v42, %v1828_v27 }
 0x4c9   : > { %v856_v46 = vpack.c.bf16 %v854_v43, %v854_v43 }
 0x4ca   : > { %v855_v47 = vpack.c.bf16 %v853_v45, %v852_v44  ;;  %v1062_v45 = vsub.s32 6, %v2404_v61 }
 0x4cc   : > { %1604 = vmatprep.mubr.msk.bf16.mxu0 %vm820_vm8, %v855_v47  ;;  %v1063_v48 = vrot.slane %v2408_v63, %v1062_v45 }
 0x4cd   : > { %1605 = vmatmul.mubr.msk.bf16.vlgmr.msra.gmra.mxu0 %vm820_vm8, %v856_v46 }
 0x4ce   : > { %1629 = vmatpush3.bf16.msra.mxu0 %v1801_v10  ;;  %v1813_v10 = vld [vmem:[%s2334_s16 + $0x18] sm:$0xff]  }
 0x4cf   : > { %1630 = vmatprep.subr.bf16.mxu0 %v1802_v28 }
 0x4d2   : > { %1631 = vmatpush3.bf16.msra.mxu0 %v1802_v28 }
 0x4d3   : > { %1632 = vmatprep.subr.bf16.mxu0 %v1803_v29 }
 0x4d6   : > { %1633 = vmatpush3.bf16.msra.mxu0 %v1803_v29 }
 0x4d7   : > { %1634 = vmatprep.subr.bf16.mxu0 %v1804_v31 }
 0x4da   : > { %1635 = vmatpush3.bf16.msra.mxu0 %v1804_v31 }
 0x4db   : > { %1636 = vmatprep.subr.bf16.mxu0 %v1805_v32 }
 0x4de   : > { %1637 = vmatpush3.bf16.msra.mxu0 %v1805_v32 }
 0x4df   : > { %1638 = vmatprep.subr.bf16.mxu0 %v1806_v33 }
 0x4e2   : > { %1639 = vmatpush3.bf16.msra.mxu0 %v1806_v33 }
 0x4e3   : > { %1640 = vmatprep.subr.bf16.mxu0 %v1807_v34 }
 0x4e6   : > { %1641 = vmatpush3.bf16.msra.mxu0 %v1807_v34 }
 0x4e7   : > { %1642 = vmatprep.subr.bf16.mxu0 %v1808_v35 }
 0x4ea   : > { %1643 = vmatpush3.bf16.msra.mxu0 %v1808_v35 }
 0x58d   : > { %v1606_v50 = vpop.f32.mrf.mxu0 }
 0x58e   : > { %v918_v55 = vpack.c.bf16 %v1606_v50, %v1606_v50 }
 0x58f   : > { %v903_v51 = vpop.f32.mrf.mxu0 }
 0x591   : > { %v1607_v52 = vpop.f32.mrf.mxu0 }
 0x593   : > { %v906_v53 = vpop.f32.mrf.mxu0 }
 0x594   : > { %v917_v54 = vpack.c.bf16 %v906_v53, %v903_v51 }
 0x596   : > { %1624 = vmatprep.mubr.bf16.mxu1 %v917_v54  ;;  %v1070_v54 = vrot.slane %v2408_v63, %v1069_v49  ;;  %v1811_v63 = vld [vmem:[%s2334_s16 + $0x28] sm:$0xff]  }
 0x597   : > { %1625 = vmatmul.mubr.bf16.vlgmr.msra.gmra.mxu1 %v918_v55 }
 0x657   : > { %v1626_v58 = vpop.f32.mrf.mxu1 }
 0x658   : > { %v1014_v59 = vadd.f32 %v1626_v58, %v922_v57 }
 0x659   : > { %v1005_v60 = vpop.f32.mrf.mxu1 }
 0x65a   : > { %v1006_v0 = vadd.f32 %v1005_v60, %v922_v57  ;;  %v2454_v7 = vadd.f32 %v1014_v59, %v2346_v4 }
 0x65b   : > { %v1627_v1 = vpop.f32.mrf.mxu1 }
 0x65c   : > { %v2451_v2 = vadd.f32 %v1006_v0, %v2344_v3  ;;  %v1026_v12 = vsel %vm449_vm0, %v2454_v7, 0.0 }
 0x65d   : > { %v1008_v8 = vpop.f32.mrf.mxu1 }
 0x65e   : > { %v1009_v11 = vadd.f32 %v1008_v8, %v922_v57  ;;  %1022 = vadd.xlane.f32.xlu0 %v2451_v2  ;;  %v1809_v8 = vld [vmem:[%s2334_s16 + $0x38] sm:$0xff]  }
 0x65f   : > { %1648 = vmatprep.subr.bf16.mxu1 %v1809_v8 }
 0x660   : > { %v2458_v9 = vadd.f32 %v1009_v11, %v2348_v5  ;;  %1649 = vmatpush3.bf16.msra.mxu1 %v1809_v8  ;;  %v1810_v11 = vld [vmem:[%s2334_s16 + $0x30] sm:$0xff]  }
 0x661   : > { %1650 = vmatprep.subr.bf16.mxu1 %v1810_v11 }
 0x662   : > { %1024 = vadd.xlane.f32.xlu1 %v2458_v9  ;;  %1027 = vadd.xlane.f32.xlu0 %v1026_v12  ;;  %v1812_v12 = vld [vmem:[%s2334_s16 + $0x20] sm:$0xff]  }
 0x664   : > { %1651 = vmatpush3.bf16.msra.mxu1 %v1810_v11 }
 0x665   : > { %1652 = vmatprep.subr.bf16.mxu1 %v1811_v63 }
 0x668   : > { %1653 = vmatpush3.bf16.msra.mxu1 %v1811_v63 }
 0x669   : > { %1654 = vmatprep.subr.bf16.mxu1 %v1812_v12 }
 0x66c   : > { %1655 = vmatpush3.bf16.msra.mxu1 %v1812_v12 }
 0x66d   : > { %1656 = vmatprep.subr.bf16.mxu1 %v1813_v10 }
 0x670   : > { %1657 = vmatpush3.bf16.msra.mxu1 %v1813_v10 }
 0x6e7   : > { %v1023_v3 = vpop.xlane.xlu0 %1022 }
 0x6e8   : > { %v1029_v13 = vmul.f32 0.03125, %v1023_v3  ;;  %v1814_v3 = vld [vmem:[%s2334_s16 + $0x10] sm:$0xff]  }
 0x6e9   : > { %1658 = vmatprep.subr.bf16.mxu1 %v1814_v3 }
 0x6ea   : > { %v1032_v4 = vsub.f32 %v2451_v2, %v1029_v13  ;;  %1659 = vmatpush3.bf16.msra.mxu1 %v1814_v3  ;;  %v1815_v13 = vld [vmem:[%s2334_s16 + $0x8] sm:$0xff]  }
 0x6eb   : > { %v1025_v14 = vpop.xlane.xlu1 %1024  ;;  %v1028_v15 = vpop.xlane.xlu0 %1027  ;;  %1660 = vmatprep.subr.bf16.mxu1 %v1815_v13 }
 0x6ec   : > { %v1030_v16 = vmul.f32 0.03125, %v1025_v14  ;;  %v1031_v18 = vmul.f32 0.03125, %v1028_v15  ;;  %v1035_v5 = vmul.f32 %v2361_v17, %v1032_v4  ;;  %v1816_v4 = vld [vmem:[%s2334_s16] sm:$0xff]   ;;  %v2491_v14 = vld [vmem:[%s2340_s18 + $0x8] sm:$0xff] }
 0x6ed   : > { %v1079_v15 = vrot.slane %v2491_v14, %v486_v62 }
 0x6ee   : > { %v1033_v19 = vsub.f32 %v2458_v9, %v1030_v16  ;;  %v1034_v20 = vsub.f32 %v2454_v7, %v1031_v18  ;;  %v1038_v21 = vmul.f32 %v1035_v5, %v1035_v5  ;;  %1661 = vmatpush3.bf16.msra.mxu1 %v1815_v13 }
 0x6ef   : > { %1662 = vmatprep.subr.bf16.mxu1 %v1816_v4 }
 0x6f0   : > { %1041 = vadd.xlane.f32.xlu1 %v1038_v21  ;;  %v1036_v24 = vmul.f32 %v2361_v17, %v1033_v19  ;;  %v1037_v25 = vmul.f32 %v2361_v17, %v1034_v20 }
 0x6f2   : > { %v1039_v23 = vmul.f32 %v1036_v24, %v1036_v24  ;;  %v1040_v26 = vmul.f32 %v1037_v25, %v1037_v25  ;;  %1663 = vmatpush3.bf16.msra.mxu1 %v1816_v4 }
 0x6f4   : > { %1043 = vadd.xlane.f32.xlu0 %v1039_v23  ;;  %v1045_v27 = vsel %vm449_vm0, %v1040_v26, 0.0 }
 0x6f5   : > { %1046 = vadd.xlane.f32.xlu1 %v1045_v27 }
 0x779   : > { %v1042_v36 = vpop.xlane.xlu1 %1041 }
 0x77a   : > { %v1048_v37 = vmul.f32 0.03125, %v1042_v36 }
 0x77c   : > { %v1051_v38 = vadd.f32 1e-05, %v1048_v37 }
 0x77d   : > { %v1044_v39 = vpop.xlane.xlu0 %1043 }
 0x77e   : > { %1835 = vrsqrt.f32 %v1051_v38  ;;  %v1049_v40 = vmul.f32 0.03125, %v1044_v39  ;;  %v1047_v41 = vpop.xlane.xlu1 %1046 }
 0x77f   : > { %v1050_v42 = vmul.f32 0.03125, %v1047_v41  ;;  %v1180_v41 = vrot.slane %v2491_v14, %v493_v6 }
 0x780   : > { %v1052_v43 = vadd.f32 1e-05, %v1049_v40 }
 0x781   : > { %v1053_v44 = vadd.f32 1e-05, %v1050_v42 }
 0x782   : > { %1837 = vrsqrt.f32 %v1052_v43 }
 0x783   : > { %1839 = vrsqrt.f32 %v1053_v44 }
 0x78b   : > { %v1836_v46 = vpop.eup %1835 }
 0x78c   : > { %v1057_v47 = vmul.f32 %v1836_v46, %v1035_v5 }
 0x78e   : > { %v1064_v53 = vmul.f32 %v1063_v48, %v1057_v47 }
 0x78f   : > { %v1838_v50 = vpop.eup %1837 }
 0x790   : > { %v1840_v51 = vpop.eup %1839  ;;  %v1058_v52 = vmul.f32 %v1838_v50, %v1036_v24  ;;  %v1071_v58 = vadd.f32 %v1070_v54, %v1064_v53 }
 0x791   : > { %v1059_v55 = vmul.f32 %v1840_v51, %v1037_v25 }
 0x792   : > { %v1065_v56 = vmul.f32 %v1063_v48, %v1058_v52 }
 0x793   : > { %v1066_v57 = vmul.f32 %v1063_v48, %v1059_v55 }
 0x794   : > { %v1072_v59 = vadd.f32 %v1070_v54, %v1065_v56 }
 0x795   : > { %v1073_v60 = vadd.f32 %v1070_v54, %v1066_v57 }
 0x796   : > { %v1074_v0 = vpack.c.bf16 %v1072_v59, %v1071_v58 }
 0x797   : > { %v1075_v1 = vpack.c.bf16 %v1073_v60, %v1073_v60 }
 0x798   : > { %1644 = vmatprep.mubr.bf16.mxu0 %v1074_v0 }
 0x799   : > { %1645 = vmatmul.mubr.bf16.vlgmr.msra.gmra.mxu0 %v1075_v1 }
 0x859   : > { %v1646_v16 = vpop.f32.mrf.mxu0 }
 0x85a   : > { %v1155_v18 = vadd.f32 %v1646_v16, %v1079_v15 }
 0x85b   : > { %v1146_v5 = vpop.f32.mrf.mxu0 }
 0x85c   : > { %v1165_v19 = vmul.f32 0.70710677, %v1155_v18  ;;  %v1147_v20 = vadd.f32 %v1146_v5, %v1079_v15  ;;  %v1162_v33 = vmul.f32 0.5, %v1155_v18 }
 0x85d   : > { %v1647_v21 = vpop.f32.mrf.mxu0 }
 0x85e   : > { %v1163_v24 = vmul.f32 0.70710677, %v1147_v20  ;;  %1841 = verf.f32 %v1165_v19  ;;  %v1160_v62 = vmul.f32 0.5, %v1147_v20 }
 0x85f   : > { %v1149_v25 = vpop.f32.mrf.mxu0 }
 0x860   : > { %1843 = verf.f32 %v1163_v24  ;;  %v1150_v23 = vadd.f32 %v1149_v25, %v1079_v15 }
 0x862   : > { %v1164_v26 = vmul.f32 0.70710677, %v1150_v23  ;;  %v1161_v34 = vmul.f32 0.5, %v1150_v23 }
 0x864   : > { %1845 = verf.f32 %v1164_v26 }
 0x86b   : > { %v1842_v27 = vpop.eup %1841 }
 0x86c   : > { %v1171_v29 = vadd.f32 1.0, %v1842_v27 }
 0x86d   : > { %v1844_v28 = vpop.eup %1843 }
 0x86e   : > { %v1169_v31 = vadd.f32 1.0, %v1844_v28  ;;  %v1174_v36 = vmul.f32 %v1171_v29, %v1162_v33 }
 0x870   : > { %v1172_v37 = vmul.f32 %v1169_v31, %v1160_v62  ;;  %v1176_v40 = vpack.c.bf16 %v1174_v36, %v1174_v36 }
 0x871   : > { %v1846_v32 = vpop.eup %1845 }
 0x872   : > { %v1170_v35 = vadd.f32 1.0, %v1846_v32 }
 0x874   : > { %v1173_v38 = vmul.f32 %v1170_v35, %v1161_v34 }
 0x876   : > { %v1175_v39 = vpack.c.bf16 %v1173_v38, %v1172_v37 }
 0x878   : > { %1664 = vmatprep.mubr.bf16.mxu1 %v1175_v39 }
 0x879   : > { %1665 = vmatmul.mubr.bf16.vlgmr.msra.gmra.mxu1 %v1176_v40 }
 0x939   : > { %v1666_v42 = vpop.f32.mrf.mxu1 }
 0x93a   : > { %v1272_v43 = vadd.f32 %v1666_v42, %v1180_v41 }
 0x93b   : > { %v1263_v44 = vpop.f32.mrf.mxu1 }
 0x93c   : > { %v1279_v45 = vadd.f32 %v1272_v43, %v2454_v7  ;;  %v1264_v46 = vadd.f32 %v1263_v44, %v1180_v41 }
 0x93d   : > { %v1667_v47 = vpop.f32.mrf.mxu1 }
 0x93e   : > { %1282 = vst [vmem:[#allocation2 + $0x10] sm:$0x3] %v1279_v45  ;;  %v1277_v48 = vadd.f32 %v1264_v46, %v2451_v2 }
 0x93f   : > { %v1266_v49 = vpop.f32.mrf.mxu1 }
 0x940   : > { %1280 = vst [vmem:[#allocation2] sm:$0xff] %v1277_v48  ;;  %v1267_v50 = vadd.f32 %v1266_v49, %v1180_v41  ;;  %1286 = sbr.rel (%p1516_p11) target bundleno = 2691 (0xa83), region = 68 }
 0x942   : > { %v1278_v51 = vadd.f32 %v1267_v50, %v2458_v9 }
 0x944   : > { %1281 = vst [vmem:[#allocation2 + $0x8] sm:$0xff] %v1278_v51 }
 0x945   : > { %v1305_v59 = vrot.slane %v2491_v14, %v729_v22  ;;  %v1310_v0 = vrot.slane %v2491_v14, %v736_v30 }
 0x94b   : > { %v1287_v6 = vld [vmem:[#allocation2] ss:$9 sm:$0x3] }
 0x94c   : > { %v1288_v52 = vsel %vm449_vm0, %v1287_v6, 0.0 }
 0x94d   : > { %1289 = vadd.xlane.f32.xlu0 %v1288_v52 }
 0x9d6   : > { %v1290_v53 = vpop.xlane.xlu0 %1289 }
 0x9d7   : > { %v1291_v7 = vmul.f32 0.03125, %v1290_v53 }
 0x9d9   : > { %v1292_v54 = vsub.f32 %v1287_v6, %v1291_v7 }
 0x9db   : > { %v1293_v55 = vmul.f32 %v2361_v17, %v1292_v54 }
 0x9dd   : > { %v1294_v56 = vmul.f32 %v1293_v55, %v1293_v55 }
 0x9df   : > { %v1295_v2 = vsel %vm449_vm0, %v1294_v56, 0.0 }
 0x9e0   : > { %1296 = vadd.xlane.f32.xlu0 %v1295_v2 }
 0xa69   : > { %v1297_v57 = vpop.xlane.xlu0 %1296 }
 0xa6a   : > { %v1298_v58 = vmul.f32 0.03125, %v1297_v57 }
 0xa6c   : > { %v1299_v9 = vadd.f32 1e-05, %v1298_v58 }
 0xa6e   : > { %1847 = vrsqrt.f32 %v1299_v9 }
 0xa7b   : > { %v1848_v60 = vpop.eup %1847 }
 0xa7c   : > { %v1301_v1 = vmul.f32 %v1848_v60, %v1293_v55 }
 0xa7e   : > { %v1306_v8 = vmul.f32 %v1305_v59, %v1301_v1 }
 0xa80   : > { %v1311_v17 = vadd.f32 %v1310_v0, %v1306_v8 }
 0xa82   : > { %1312 = vst [vmem:[#allocation12] sm:$0x3] %v1311_v17 }
 0xa83 PF: > { %p1708_p13 = scmp.eq.s32.totalorder %s2220_s30, 1  ;;  %s2073_s8 = smov [#allocation12]  }
 0xa84   : > { %s1320_s7 = sshll.u32 %s2073_s8, 4  ;;  %s1321_s7 = int_to_ptr.vmem [resolvable:$true] %s1320_s7 }
 0xa85   : > { %s1987_s11 = scalar_lea.vmem %s1321_s7, 32  ;;  %p1994_p2 = scmp.lt.s32.totalorder %s1321_s7, %s1321_s7 }
 0xa86   : > { %p1988_p0 = scmp.ne.s32.totalorder %s1321_s7, %s1987_s11  ;;  %p1995_p8 = scmp.lt.s32.totalorder %s1987_s11, %s1987_s11 }
 0xa88   : > { %p1989_p6 = pnand %p1988_p0, %p1708_p13  ;;  %p1996_p12 = por %p1995_p8, %p1994_p2 }
 0xa8a   : > { %p1990_p4 = pneg %p1989_p6 }
 0xa8c   : > { %p1997_p1 = pnand %p1996_p12, %p1990_p4 }
 0xa8e   : > { %2000 = shalt.err (!%p1997_p1)
}
 0xa8f   : > { %1685 = dma.vmem_to_hbm [thread:$0]  (%p1708_p13), %s1321_s7, 32, %s2542_s5, [#allocation5]  }
 0xa90   : > { %2040 = dma.done.wait (%p1708_p13), [#allocation5], 32  }
 0xa91   : > { %2042 = vsyncadd (%p1708_p13), [#allocation5], 4294967264 }
 0xa92 PF: > { %p20_p7 = scmp.ge.s32.totalorder %s2125_s22, 4   ;;  %s2560_s18 = smov %s2049_s19 }
 0xa93   : > { %s2561_s19 = smov %s2053_s20  ;;  %s2562_s20 = smov %s2135_s25 }
 0xa94   : > { %s2563_s21 = smov %s2125_s22  ;;  %22 = sbr.rel (!%p20_p7) target bundleno = 10 (0xa), region = 125 }
 0xa99   :  { %1333 = vsyncpa [#allocation4], 1 }
 0xa9a   :  { %1335 = vsyncpa [#allocation4 + $0x1], 1 }
 0xa9b   :  { %1336 = vsyncpa [#allocation7], 1 }
 0xa9c   :  { %1338 = vsyncpa [#allocation7 + $0x1], 1 }
 0xa9d   :  { %1339 = vsyncpa [#allocation10], 1 }
 0xa9e   :  { %1341 = vsyncpa [#allocation10 + $0x1], 1 }
 0xa9f   :  { %1342 = vsyncpa [#allocation5], 1 }
 0xaa0   :  { %1344 = vsyncpa [#allocation5 + $0x1], 1 }

</bundles_post_ra>
